<compile_context>
chip_gen: v7x
topology: tpu7x:2x2x1
jax: 0.10.0
libtpu: 0.0.40
codegen_flags: <defaults>
</compile_context>

<pallas_src>
import functools

import jax
import jax.numpy as jnp
from jax.experimental import pallas as pl
from jax.experimental.pallas import tpu as pltpu


# --------------------------------------------------------------------------------------
# In-kernel math helpers
# --------------------------------------------------------------------------------------
def _gelu_tanh(x):
    # tanh-approximate GELU (torch GELU(approximate='tanh')).  jnp.tanh uses the EUP
    # slot, so this is nearly free next to the MXU GEMMs (the exact-erf polynomial was
    # ~12 VALU ops/element and could become the binding slot on v6e/v7x).
    c = 0.7978845608028654  # sqrt(2/pi)
    return 0.5 * x * (1.0 + jnp.tanh(c * (x + 0.044715 * x * x * x)))


def _layernorm(x, gamma, beta, eps=1e-5):
    # torch.nn.LayerNorm over last dim: biased variance, eps inside sqrt.
    mean = jnp.mean(x, axis=-1, keepdims=True)
    var = jnp.mean((x - mean) ** 2, axis=-1, keepdims=True)
    return (x - mean) * jax.lax.rsqrt(var + eps) * gamma + beta


# --------------------------------------------------------------------------------------
# Pallas kernels
# --------------------------------------------------------------------------------------
def fused_residual_mlp_kernel(x_ref, g1_ref, bt1_ref, g2_ref, bt2_ref,
                              w1_ref, b1_ref, w2_ref, b2_ref,
                              o_ref, y_scr, acc_scr):
    # Computes (per row):  z = x + norm1(x);  out = z + fc2(gelu(fc1(norm2(z))))
    # Grid axis 0: row tiles ("parallel").  Grid axis 1: hidden-dim chunks ("arbitrary"),
    # streaming w1/w2 and bounding the f32 GELU intermediate to (tm, tk).
    k = pl.program_id(1)

    @pl.when(k == 0)
    def _():
        x = x_ref[...].astype(jnp.float32)                            # (TM, C)
        z = x + _layernorm(x, g1_ref[...], bt1_ref[...])              # shortcut + norm1(x)
        y_scr[...] = _layernorm(z, g2_ref[...], bt2_ref[...]).astype(jnp.bfloat16)
        acc_scr[...] = z + b2_ref[...]                                # residual + fc2 bias (once)

    h = jnp.dot(y_scr[...], w1_ref[...],
                preferred_element_type=jnp.float32) + b1_ref[...]     # (TM, TK)
    h = _gelu_tanh(h)
    acc_scr[...] += jnp.dot(h.astype(jnp.bfloat16), w2_ref[...],
                            preferred_element_type=jnp.float32)       # (TM, C)

    @pl.when(k == pl.num_programs(1) - 1)
    def _():
        o_ref[...] = acc_scr[...].astype(o_ref.dtype)


def window_attention_kernel(x_ref, g1_ref, bt1_ref, wqkv_ref, bqkv_ref, wp_ref, bp_ref,
                            o_ref, *, num_heads):
    # x_ref block: (WB, N, C) -> WB windows of N voxels each, processed per grid step.
    wb, n, c = x_ref.shape
    hd = c // num_heads
    rows = wb * n

    x = x_ref[...].reshape(rows, c).astype(jnp.float32)               # (WB*N, C)
    xn = _layernorm(x, g1_ref[...], bt1_ref[...])                     # fused norm1

    # Fused QKV GEMM; q-scale is pre-folded into the q columns of wqkv/bqkv.
    qkv = jnp.dot(xn.astype(jnp.bfloat16), wqkv_ref[...],
                  preferred_element_type=jnp.float32) + bqkv_ref[...]
    qkv = qkv.astype(jnp.bfloat16)                                    # single cast

    # TODO(synk): per-head lane slicing remains (head batching would need a sublane
    # transpose of (wb, n, heads, hd) that is risky to lower); the output projection is
    # now a single K=C GEMM instead of num_heads K=hd GEMMs.
    ctx_heads = []
    for h in range(num_heads):                                        # static unroll over heads
        q = qkv[:, h * hd:(h + 1) * hd].reshape(wb, n, hd)
        kk = qkv[:, c + h * hd:c + (h + 1) * hd].reshape(wb, n, hd)
        v = qkv[:, 2 * c + h * hd:2 * c + (h + 1) * hd].reshape(wb, n, hd)
        s = jnp.einsum('bnd,bmd->bnm', q, kk, preferred_element_type=jnp.float32)  # (WB,N,N)
        s = s - jnp.max(s, axis=-1, keepdims=True)                    # stable softmax
        e = jnp.exp(s)
        p = e * pl.reciprocal(jnp.sum(e, axis=-1, keepdims=True), approx=True)
        ctx = jnp.einsum('bnm,bmd->bnd', p.astype(jnp.bfloat16), v,
                         preferred_element_type=jnp.float32)          # (WB, N, hd)
        ctx_heads.append(ctx.reshape(rows, hd))

    ctx_all = jnp.concatenate(ctx_heads, axis=-1).astype(jnp.bfloat16)  # (rows, C) head-major
    y = jnp.dot(ctx_all, wp_ref[...], preferred_element_type=jnp.float32) + bp_ref[...]
    o_ref[...] = y.reshape(wb, n, c).astype(o_ref.dtype)


# --------------------------------------------------------------------------------------
# Tiling / chip-config helpers
# --------------------------------------------------------------------------------------
def _pick_block(total, unit, target, min_grid=2):
    """Largest multiple-of-`unit` divisor of `total` <= target that still leaves at least
    `min_grid` grid steps (so all TensorCores get work + DMA/compute overlap)."""
    divs = [d for d in range(unit, min(target, total) + 1, unit) if total % d == 0]
    if not divs:
        return unit
    for d in reversed(divs):
        if total // d >= min_grid:
            return d
    return divs[-1]


def _pick_hidden_block(hid, target=512):
    """Hidden-dim chunk: multiple of 128 (lane tiling) dividing hid, else the full hid."""
    if hid <= target:
        return hid
    best = None
    for d in range(128, target + 1, 128):
        if hid % d == 0:
            best = d
    return best if best is not None else hid


@functools.lru_cache(maxsize=1)
def _chip_config():
    kind = ""
    try:
        kind = jax.devices()[0].device_kind.lower()
    except Exception:
        pass
    if "v7" in kind:
        # 64 MiB physical VMEM, 2 TensorCores: conservative budget, >=2 steps per core.
        return {"vmem_limit_bytes": 32 * 1024 * 1024, "target_rows": 256, "min_grid": 4}
    if any(t in kind for t in ("v4", "v5", "v6")):
        # 128 MiB physical VMEM, single TensorCore: bigger row tiles, looser budget.
        return {"vmem_limit_bytes": 64 * 1024 * 1024, "target_rows": 1024, "min_grid": 2}
    return {"vmem_limit_bytes": 32 * 1024 * 1024, "target_rows": 512, "min_grid": 2}


def _spec(shape, index_map, mode):
    if mode is None:
        return pl.BlockSpec(shape, index_map)
    return pl.BlockSpec(shape, index_map, pipeline_mode=mode)


# --------------------------------------------------------------------------------------
# Pallas wrappers
# --------------------------------------------------------------------------------------
def fused_residual_mlp_pallas(x2d, g1, bt1, g2, bt2, w1_bf16, b1, w2_bf16, b2, *, cfg):
    m, c = x2d.shape
    hid = w1_bf16.shape[1]
    assert m % 8 == 0, "row count must be a multiple of 8"  # TODO(synk): pad ragged rows
    assert hid % 8 == 0
    tm = _pick_block(m, 8, cfg["target_rows"], cfg["min_grid"])
    tk = _pick_hidden_block(hid)
    n_k = hid // tk

    flops = 4 * m * c * hid + 12 * m * c                      # two GEMMs + LN/residuals
    transcendentals = m * hid                                  # one tanh per hidden element
    bytes_accessed = 2 * m * c * 4 + 2 * c * hid * 2 + (hid + 5 * c) * 4
    cost = pl.CostEstimate(flops=flops, transcendentals=transcendentals,
                           bytes_accessed=bytes_accessed)

    def run(use_single_buffer):
        const_mode = pl.Buffered(1) if use_single_buffer else None
        # w1/w2/b1 are streamed over k; keep double-buffering unless there is one chunk.
        w_mode = const_mode if n_k == 1 else None
        const = lambda i, k: (0, 0)
        return pl.pallas_call(
            fused_residual_mlp_kernel,
            out_shape=jax.ShapeDtypeStruct((m, c), x2d.dtype),
            grid=(m // tm, n_k),
            in_specs=[
                pl.BlockSpec((tm, c), lambda i, k: (i, 0)),                       # x rows
                _spec((1, c), const, const_mode), _spec((1, c), const, const_mode),  # norm1
                _spec((1, c), const, const_mode), _spec((1, c), const, const_mode),  # norm2
                _spec((c, tk), lambda i, k: (0, k), w_mode),                      # fc1 W chunk
                _spec((1, tk), lambda i, k: (0, k), w_mode),                      # fc1 b chunk
                _spec((tk, c), lambda i, k: (k, 0), w_mode),                      # fc2 W chunk
                _spec((1, c), const, const_mode),                                 # fc2 b
            ],
            out_specs=pl.BlockSpec((tm, c), lambda i, k: (i, 0)),
            scratch_shapes=[pltpu.VMEM((tm, c), jnp.bfloat16),   # normed z (reused per chunk)
                            pltpu.VMEM((tm, c), jnp.float32)],   # f32 accumulator
            compiler_params=pltpu.CompilerParams(
                dimension_semantics=("parallel", "arbitrary"),
                vmem_limit_bytes=cfg["vmem_limit_bytes"]),
            cost_estimate=cost,
        )(x2d, g1.reshape(1, c), bt1.reshape(1, c), g2.reshape(1, c), bt2.reshape(1, c),
          w1_bf16, b1.reshape(1, hid), w2_bf16, b2.reshape(1, c))

    try:
        out = run(True)
        jax.block_until_ready(out)
        return out
    except Exception:
        # Fallback for JAX builds that reject single-buffered pipeline_mode.
        return run(False)


def window_attention_pallas(x_windows, g1, bt1, wqkv_bf16, bqkv, wproj_bf16, bproj,
                            *, num_heads, cfg):
    nw, n, c = x_windows.shape
    wb = _pick_block(nw, 1, max(1, cfg["target_rows"] // n), cfg["min_grid"])
    rows = nw * n
    kern = functools.partial(window_attention_kernel, num_heads=num_heads)

    flops = 2 * rows * c * 3 * c + 4 * nw * n * n * c + 2 * rows * c * c
    transcendentals = nw * num_heads * n * n
    bytes_accessed = 2 * rows * c * 4 + 4 * c * c * 2 + 6 * c * 4
    cost = pl.CostEstimate(flops=flops, transcendentals=transcendentals,
                           bytes_accessed=bytes_accessed)

    def run(use_single_buffer):
        mode = pl.Buffered(1) if use_single_buffer else None
        const = lambda i: (0, 0)
        return pl.pallas_call(
            kern,
            out_shape=jax.ShapeDtypeStruct((nw, n, c), x_windows.dtype),
            grid=(nw // wb,),
            in_specs=[
                pl.BlockSpec((wb, n, c), lambda i: (i, 0, 0)),
                _spec((1, c), const, mode), _spec((1, c), const, mode),            # norm1
                _spec((c, 3 * c), const, mode), _spec((1, 3 * c), const, mode),    # fused QKV
                _spec((c, c), const, mode), _spec((1, c), const, mode),            # proj
            ],
            out_specs=pl.BlockSpec((wb, n, c), lambda i: (i, 0, 0)),
            compiler_params=pltpu.CompilerParams(
                dimension_semantics=("parallel",),
                vmem_limit_bytes=cfg["vmem_limit_bytes"]),
            cost_estimate=cost,
        )(x_windows, g1.reshape(1, c), bt1.reshape(1, c),
          wqkv_bf16, bqkv.reshape(1, 3 * c), wproj_bf16, bproj.reshape(1, c))

    try:
        out = run(True)
        jax.block_until_ready(out)
        return out
    except Exception:
        return run(False)


# --------------------------------------------------------------------------------------
# Glue: window partition (pure reshape+transpose, same as the PyTorch helper)
# --------------------------------------------------------------------------------------
def window_partition(x, ws):
    B, D, H, W, C = x.shape
    x = x.reshape(B, D // ws, ws, H // ws, ws, W // ws, ws, C)
    return x.transpose(0, 1, 3, 5, 2, 4, 6, 7).reshape(-1, ws, ws, ws, C)


# --------------------------------------------------------------------------------------
# One-time weight preparation (hoisted out of the forward pass)
# --------------------------------------------------------------------------------------
def prepare_params(params, num_heads):
    c = params["g1"].shape[0]
    scale = (c // num_heads) ** -0.5
    # Fuse Q/K/V into one (C, 3C) weight; fold the q-scale in before the bf16 cast.
    wqkv = jnp.concatenate([params["wq"] * scale, params["wk"], params["wv"]], axis=1)
    bqkv = jnp.concatenate([params["bq"] * scale, params["bk"], params["bv"]])
    return {
        "g1": params["g1"], "bt1": params["bt1"],
        "g2": params["g2"], "bt2": params["bt2"],
        "w1": params["w1"].astype(jnp.bfloat16), "b1": params["b1"],
        "w2": params["w2"].astype(jnp.bfloat16), "b2": params["b2"],
        "wqkv": wqkv.astype(jnp.bfloat16), "bqkv": bqkv,
        "wproj": params["wproj"].astype(jnp.bfloat16), "bproj": params["bproj"],
    }


# --------------------------------------------------------------------------------------
# Full TransformerBlock forward
# --------------------------------------------------------------------------------------
def transformer_block_forward(x, prepared, *, input_resolution, window_size, num_heads,
                              shift_size=0, compute_attention=True):
    D, H, W = input_resolution
    B, L, C = x.shape
    assert L == D * H * W, "input feature has wrong size"
    cfg = _chip_config()

    # ---- live path (what the reference actually keeps): one fused Pallas kernel ----
    # out = z + mlp(norm2(z)),  z = shortcut + norm1(shortcut)
    out = fused_residual_mlp_pallas(
        x.reshape(B * L, C),
        prepared["g1"], prepared["bt1"], prepared["g2"], prepared["bt2"],
        prepared["w1"], prepared["b1"], prepared["w2"], prepared["b2"], cfg=cfg,
    ).reshape(B, L, C)

    # ---- attention path: computed then discarded by the reference; gated so callers
    #      that only need `out` can skip the dead work entirely. ----
    attn_windows = None
    if compute_attention:
        xv = x.reshape(B, D, H, W, C)
        # LayerNorm commutes with the spatial roll/partition, so norm1 is fused in-kernel.
        if shift_size > 0:
            shifted = jnp.roll(xv, shift=(-shift_size, -shift_size, -shift_size),
                               axis=(1, 2, 3))
        else:
            shifted = xv
        x_windows = window_partition(shifted, window_size).reshape(-1, window_size ** 3, C)
        attn_windows = window_attention_pallas(
            x_windows, prepared["g1"], prepared["bt1"],
            prepared["wqkv"], prepared["bqkv"], prepared["wproj"], prepared["bproj"],
            num_heads=num_heads, cfg=cfg)
        # TODO(synk): window_reverse + reverse cyclic shift omitted — the reference
        # immediately overwrites that tensor, so only its shape (B, D, H, W, C) is observable.

    # The PyTorch module returns shifted_x.shape; return it plus the computed tensors.
    return (B, D, H, W, C), out, attn_windows


# --------------------------------------------------------------------------------------
# Deterministic parameter init + run
# --------------------------------------------------------------------------------------
def init_params(key, dim, num_heads, mlp_ratio=4):
    hid = dim * mlp_ratio
    ks = jax.random.split(key, 8)
    s = 0.02
    # nn.Linear(dim, 3*dim): weight (3C, C); output channel layout [q|k|v] x [heads, head_dim].
    wqkv = s * jax.random.normal(ks[0], (3 * dim, dim), jnp.float32)
    bqkv = s * jax.random.normal(ks[1], (3 * dim,), jnp.float32)
    wproj = s * jax.random.normal(ks[2], (dim, dim), jnp.float32)
    bproj = s * jax.random.normal(ks[3], (dim,), jnp.float32)
    w1 = s * jax.random.normal(ks[4], (hid, dim), jnp.float32)
    b1 = s * jax.random.normal(ks[5], (hid,), jnp.float32)
    w2 = s * jax.random.normal(ks[6], (dim, hid), jnp.float32)
    b2 = s * jax.random.normal(ks[7], (dim,), jnp.float32)
    return {
        "g1": jnp.ones((dim,), jnp.float32), "bt1": jnp.zeros((dim,), jnp.float32),
        "g2": jnp.ones((dim,), jnp.float32), "bt2": jnp.zeros((dim,), jnp.float32),
        # transpose to (in, out) so kernels do x @ W; split qkv exactly like torch's slicing.
        "wq": wqkv[0 * dim:1 * dim].T, "bq": bqkv[0 * dim:1 * dim],
        "wk": wqkv[1 * dim:2 * dim].T, "bk": bqkv[1 * dim:2 * dim],
        "wv": wqkv[2 * dim:3 * dim].T, "bv": bqkv[2 * dim:3 * dim],
        "wproj": wproj.T, "bproj": bproj,
        "w1": w1.T, "b1": b1,
        "w2": w2.T, "b2": b2,
    }


if __name__ == "__main__":
    # Small, module-consistent shapes.
    dim = 32
    input_resolution = (4, 4, 4)   # D, H, W
    window_size = 2
    num_heads = 4
    B = 2
    D, H, W = input_resolution
    L = D * H * W

    key = jax.random.PRNGKey(0)
    kx, kp = jax.random.split(key)
    x = jax.random.normal(kx, (B, L, dim), jnp.float32)
    params = init_params(kp, dim, num_heads)
    prepared = prepare_params(params, num_heads)   # one-time weight prep (hoisted)

    shape_out, out, attn_windows = transformer_block_forward(
        x, prepared,
        input_resolution=input_resolution,
        window_size=window_size,
        num_heads=num_heads,
        shift_size=0,
        compute_attention=True,
    )

    jax.block_until_ready(out)
    jax.block_until_ready(attn_windows)

    n_windows = B * (D // window_size) * (H // window_size) * (W // window_size)
    assert shape_out == (B, D, H, W, dim), shape_out
    assert out.shape == (B, L, dim), out.shape
    assert attn_windows.shape == (n_windows, window_size ** 3, dim), attn_windows.shape
    assert bool(jnp.all(jnp.isfinite(out))) and bool(jnp.all(jnp.isfinite(attn_windows)))
    print("KERNEL_OK")
</pallas_src>

<mosaic_0001>
module attributes {stable_mosaic.version = 11 : i64} {
  func.func @fused_residual_mlp_kernel(%arg0: i32, %arg1: i32, %arg2: memref<64x32xf32, #tpu.memory_space<vmem>>, %arg3: memref<1x32xf32, #tpu.memory_space<vmem>>, %arg4: memref<1x32xf32, #tpu.memory_space<vmem>>, %arg5: memref<1x32xf32, #tpu.memory_space<vmem>>, %arg6: memref<1x32xf32, #tpu.memory_space<vmem>>, %arg7: memref<32x128xbf16, #tpu.memory_space<vmem>>, %arg8: memref<1x128xf32, #tpu.memory_space<vmem>>, %arg9: memref<128x32xbf16, #tpu.memory_space<vmem>>, %arg10: memref<1x32xf32, #tpu.memory_space<vmem>>, %arg11: memref<64x32xf32, #tpu.memory_space<vmem>>, %arg12: memref<64x32xbf16, #tpu.memory_space<vmem>>, %arg13: memref<64x32xf32, #tpu.memory_space<vmem>>) attributes {dimension_semantics = [#tpu.dimension_semantics<parallel>, #tpu.dimension_semantics<arbitrary>], iteration_bounds = array<i64: 2, 1>, scalar_prefetch = 0 : i64, scratch_operands = 2 : i64, tpu.core_type = #tpu.core_type<tc>, window_params = [{transform_indices = @transform_0, window_bounds = array<i64: 64, 32>}, {pipeline_mode = #tpu.pipeline_mode<synchronous>, transform_indices = @transform_1, window_bounds = array<i64: 1, 32>}, {pipeline_mode = #tpu.pipeline_mode<synchronous>, transform_indices = @transform_2, window_bounds = array<i64: 1, 32>}, {pipeline_mode = #tpu.pipeline_mode<synchronous>, transform_indices = @transform_3, window_bounds = array<i64: 1, 32>}, {pipeline_mode = #tpu.pipeline_mode<synchronous>, transform_indices = @transform_4, window_bounds = array<i64: 1, 32>}, {pipeline_mode = #tpu.pipeline_mode<synchronous>, transform_indices = @transform_5, window_bounds = array<i64: 32, 128>}, {pipeline_mode = #tpu.pipeline_mode<synchronous>, transform_indices = @transform_6, window_bounds = array<i64: 1, 128>}, {pipeline_mode = #tpu.pipeline_mode<synchronous>, transform_indices = @transform_7, window_bounds = array<i64: 128, 32>}, {pipeline_mode = #tpu.pipeline_mode<synchronous>, transform_indices = @transform_8, window_bounds = array<i64: 1, 32>}, {transform_indices = @transform_9, window_bounds = array<i64: 64, 32>}]} {
    %c0_i32 = arith.constant 0 : i32
    %0 = arith.cmpi eq, %arg1, %c0_i32 : i32
    %1 = arith.extui %0 : i1 to i32
    %c0_i32_0 = arith.constant 0 : i32
    %2 = arith.cmpi ne, %1, %c0_i32_0 : i32
    scf.if %2 {
      %c0_19 = arith.constant 0 : index
      %c0_20 = arith.constant 0 : index
      %31 = vector.load %arg2[%c0_19, %c0_20] : memref<64x32xf32, #tpu.memory_space<vmem>>, vector<64x32xf32>
      %c0_21 = arith.constant 0 : index
      %c0_22 = arith.constant 0 : index
      %32 = vector.load %arg3[%c0_21, %c0_22] : memref<1x32xf32, #tpu.memory_space<vmem>>, vector<1x32xf32>
      %c0_23 = arith.constant 0 : index
      %c0_24 = arith.constant 0 : index
      %33 = vector.load %arg4[%c0_23, %c0_24] : memref<1x32xf32, #tpu.memory_space<vmem>>, vector<1x32xf32>
      %cst_25 = arith.constant dense<0.000000e+00> : vector<64xf32>
      %34 = vector.multi_reduction <add>, %31, %cst_25 [1] : vector<64x32xf32> to vector<64xf32>
      %35 = vector.shape_cast %34 : vector<64xf32> to vector<64x1xf32>
      %cst_26 = arith.constant 3.200000e+01 : f32
      %36 = vector.broadcast %cst_26 : f32 to vector<64x1xf32>
      %37 = arith.divf %35, %36 : vector<64x1xf32>
      %38 = vector.broadcast %37 : vector<64x1xf32> to vector<64x32xf32>
      %39 = arith.subf %31, %38 : vector<64x32xf32>
      %40 = arith.mulf %39, %39 : vector<64x32xf32>
      %cst_27 = arith.constant dense<0.000000e+00> : vector<64xf32>
      %41 = vector.multi_reduction <add>, %40, %cst_27 [1] : vector<64x32xf32> to vector<64xf32>
      %42 = vector.shape_cast %41 : vector<64xf32> to vector<64x1xf32>
      %cst_28 = arith.constant 3.200000e+01 : f32
      %43 = vector.broadcast %cst_28 : f32 to vector<64x1xf32>
      %44 = arith.divf %42, %43 : vector<64x1xf32>
      %45 = vector.broadcast %37 : vector<64x1xf32> to vector<64x32xf32>
      %46 = arith.subf %31, %45 : vector<64x32xf32>
      %cst_29 = arith.constant 9.99999974E-6 : f32
      %47 = vector.broadcast %cst_29 : f32 to vector<64x1xf32>
      %48 = arith.addf %44, %47 : vector<64x1xf32>
      %49 = math.rsqrt %48 : vector<64x1xf32>
      %50 = vector.broadcast %49 : vector<64x1xf32> to vector<64x32xf32>
      %51 = arith.mulf %46, %50 : vector<64x32xf32>
      %52 = vector.broadcast %32 : vector<1x32xf32> to vector<64x32xf32>
      %53 = arith.mulf %51, %52 : vector<64x32xf32>
      %54 = vector.broadcast %33 : vector<1x32xf32> to vector<64x32xf32>
      %55 = arith.addf %53, %54 : vector<64x32xf32>
      %56 = arith.addf %31, %55 : vector<64x32xf32>
      %c0_30 = arith.constant 0 : index
      %c0_31 = arith.constant 0 : index
      %57 = vector.load %arg5[%c0_30, %c0_31] : memref<1x32xf32, #tpu.memory_space<vmem>>, vector<1x32xf32>
      %c0_32 = arith.constant 0 : index
      %c0_33 = arith.constant 0 : index
      %58 = vector.load %arg6[%c0_32, %c0_33] : memref<1x32xf32, #tpu.memory_space<vmem>>, vector<1x32xf32>
      %cst_34 = arith.constant dense<0.000000e+00> : vector<64xf32>
      %59 = vector.multi_reduction <add>, %56, %cst_34 [1] : vector<64x32xf32> to vector<64xf32>
      %60 = vector.shape_cast %59 : vector<64xf32> to vector<64x1xf32>
      %cst_35 = arith.constant 3.200000e+01 : f32
      %61 = vector.broadcast %cst_35 : f32 to vector<64x1xf32>
      %62 = arith.divf %60, %61 : vector<64x1xf32>
      %63 = vector.broadcast %62 : vector<64x1xf32> to vector<64x32xf32>
      %64 = arith.subf %56, %63 : vector<64x32xf32>
      %65 = arith.mulf %64, %64 : vector<64x32xf32>
      %cst_36 = arith.constant dense<0.000000e+00> : vector<64xf32>
      %66 = vector.multi_reduction <add>, %65, %cst_36 [1] : vector<64x32xf32> to vector<64xf32>
      %67 = vector.shape_cast %66 : vector<64xf32> to vector<64x1xf32>
      %cst_37 = arith.constant 3.200000e+01 : f32
      %68 = vector.broadcast %cst_37 : f32 to vector<64x1xf32>
      %69 = arith.divf %67, %68 : vector<64x1xf32>
      %70 = vector.broadcast %62 : vector<64x1xf32> to vector<64x32xf32>
      %71 = arith.subf %56, %70 : vector<64x32xf32>
      %cst_38 = arith.constant 9.99999974E-6 : f32
      %72 = vector.broadcast %cst_38 : f32 to vector<64x1xf32>
      %73 = arith.addf %69, %72 : vector<64x1xf32>
      %74 = math.rsqrt %73 : vector<64x1xf32>
      %75 = vector.broadcast %74 : vector<64x1xf32> to vector<64x32xf32>
      %76 = arith.mulf %71, %75 : vector<64x32xf32>
      %77 = vector.broadcast %57 : vector<1x32xf32> to vector<64x32xf32>
      %78 = arith.mulf %76, %77 : vector<64x32xf32>
      %79 = vector.broadcast %58 : vector<1x32xf32> to vector<64x32xf32>
      %80 = arith.addf %78, %79 : vector<64x32xf32>
      %81 = arith.truncf %80 : vector<64x32xf32> to vector<64x32xbf16>
      %c0_39 = arith.constant 0 : index
      %c0_40 = arith.constant 0 : index
      %82 = vector.load %arg12[%c0_39, %c0_40] : memref<64x32xbf16, #tpu.memory_space<vmem>>, vector<64x32xbf16>
      tpu.vector_store %arg12[%c0_39, %c0_40], %81 {strides = array<i32>} : memref<64x32xbf16, #tpu.memory_space<vmem>>, vector<64x32xbf16>,
      %c0_41 = arith.constant 0 : index
      %c0_42 = arith.constant 0 : index
      %83 = vector.load %arg10[%c0_41, %c0_42] : memref<1x32xf32, #tpu.memory_space<vmem>>, vector<1x32xf32>
      %84 = vector.broadcast %83 : vector<1x32xf32> to vector<64x32xf32>
      %85 = arith.addf %56, %84 : vector<64x32xf32>
      %c0_43 = arith.constant 0 : index
      %c0_44 = arith.constant 0 : index
      %86 = vector.load %arg13[%c0_43, %c0_44] : memref<64x32xf32, #tpu.memory_space<vmem>>, vector<64x32xf32>
      tpu.vector_store %arg13[%c0_43, %c0_44], %85 {strides = array<i32>} : memref<64x32xf32, #tpu.memory_space<vmem>>, vector<64x32xf32>,
    } else {
    }
    %c0 = arith.constant 0 : index
    %c0_1 = arith.constant 0 : index
    %3 = vector.load %arg12[%c0, %c0_1] : memref<64x32xbf16, #tpu.memory_space<vmem>>, vector<64x32xbf16>
    %c0_2 = arith.constant 0 : index
    %c0_3 = arith.constant 0 : index
    %4 = vector.load %arg7[%c0_2, %c0_3] : memref<32x128xbf16, #tpu.memory_space<vmem>>, vector<32x128xbf16>
    %cst = arith.constant dense<0.000000e+00> : vector<64x128xf32>
    %5 = tpu.matmul %3, %4, %cst {dimension_numbers = #tpu.dot_dimension_numbers<[1], [0], [0], [1], [0, 0, 1, 1], [], []>} : vector<64x32xbf16>, vector<32x128xbf16>, vector<64x128xf32> -> vector<64x128xf32>
    %c0_4 = arith.constant 0 : index
    %c0_5 = arith.constant 0 : index
    %6 = vector.load %arg8[%c0_4, %c0_5] : memref<1x128xf32, #tpu.memory_space<vmem>>, vector<1x128xf32>
    %7 = vector.broadcast %6 : vector<1x128xf32> to vector<64x128xf32>
    %8 = arith.addf %5, %7 : vector<64x128xf32>
    %cst_6 = arith.constant 5.000000e-01 : f32
    %9 = vector.broadcast %cst_6 : f32 to vector<64x128xf32>
    %10 = arith.mulf %9, %8 : vector<64x128xf32>
    %cst_7 = arith.constant 4.471500e-02 : f32
    %11 = vector.broadcast %cst_7 : f32 to vector<64x128xf32>
    %12 = arith.mulf %11, %8 : vector<64x128xf32>
    %13 = arith.mulf %12, %8 : vector<64x128xf32>
    %14 = arith.mulf %13, %8 : vector<64x128xf32>
    %15 = arith.addf %8, %14 : vector<64x128xf32>
    %cst_8 = arith.constant 0.797884583 : f32
    %16 = vector.broadcast %cst_8 : f32 to vector<64x128xf32>
    %17 = arith.mulf %16, %15 : vector<64x128xf32>
    %18 = math.tanh %17 : vector<64x128xf32>
    %cst_9 = arith.constant 1.000000e+00 : f32
    %19 = vector.broadcast %cst_9 : f32 to vector<64x128xf32>
    %20 = arith.addf %19, %18 : vector<64x128xf32>
    %21 = arith.mulf %10, %20 : vector<64x128xf32>
    %c0_10 = arith.constant 0 : index
    %c0_11 = arith.constant 0 : index
    %22 = vector.load %arg13[%c0_10, %c0_11] : memref<64x32xf32, #tpu.memory_space<vmem>>, vector<64x32xf32>
    %23 = arith.truncf %21 : vector<64x128xf32> to vector<64x128xbf16>
    %c0_12 = arith.constant 0 : index
    %c0_13 = arith.constant 0 : index
    %24 = vector.load %arg9[%c0_12, %c0_13] : memref<128x32xbf16, #tpu.memory_space<vmem>>, vector<128x32xbf16>
    %cst_14 = arith.constant dense<0.000000e+00> : vector<64x32xf32>
    %25 = tpu.matmul %23, %24, %cst_14 {dimension_numbers = #tpu.dot_dimension_numbers<[1], [0], [0], [1], [0, 0, 1, 1], [], []>} : vector<64x128xbf16>, vector<128x32xbf16>, vector<64x32xf32> -> vector<64x32xf32>
    %26 = arith.addf %22, %25 : vector<64x32xf32>
    %c0_15 = arith.constant 0 : index
    %c0_16 = arith.constant 0 : index
    %27 = vector.load %arg13[%c0_15, %c0_16] : memref<64x32xf32, #tpu.memory_space<vmem>>, vector<64x32xf32>
    tpu.vector_store %arg13[%c0_15, %c0_16], %26 {strides = array<i32>} : memref<64x32xf32, #tpu.memory_space<vmem>>, vector<64x32xf32>,
    %c0_i32_17 = arith.constant 0 : i32
    %28 = arith.cmpi eq, %arg1, %c0_i32_17 : i32
    %29 = arith.extui %28 : i1 to i32
    %c0_i32_18 = arith.constant 0 : i32
    %30 = arith.cmpi ne, %29, %c0_i32_18 : i32
    scf.if %30 {
      %c0_19 = arith.constant 0 : index
      %c0_20 = arith.constant 0 : index
      %31 = vector.load %arg13[%c0_19, %c0_20] : memref<64x32xf32, #tpu.memory_space<vmem>>, vector<64x32xf32>
      %c0_21 = arith.constant 0 : index
      %c0_22 = arith.constant 0 : index
      %32 = vector.load %arg11[%c0_21, %c0_22] : memref<64x32xf32, #tpu.memory_space<vmem>>, vector<64x32xf32>
      tpu.vector_store %arg11[%c0_21, %c0_22], %31 {strides = array<i32>} : memref<64x32xf32, #tpu.memory_space<vmem>>, vector<64x32xf32>,
    } else {
    }
    return
  }
  func.func @transform_0(%arg0: i32, %arg1: i32) -> (i32, i32) {
    %c0_i32 = arith.constant 0 : i32
    %c0_i32_0 = arith.constant 0 : i32
    return %arg0, %c0_i32 : i32, i32
  }
  func.func @transform_1(%arg0: i32, %arg1: i32) -> (i32, i32) {
    %c0_i32 = arith.constant 0 : i32
    %c0_i32_0 = arith.constant 0 : i32
    %c0_i32_1 = arith.constant 0 : i32
    return %c0_i32, %c0_i32_0 : i32, i32
  }
  func.func @transform_2(%arg0: i32, %arg1: i32) -> (i32, i32) {
    %c0_i32 = arith.constant 0 : i32
    %c0_i32_0 = arith.constant 0 : i32
    %c0_i32_1 = arith.constant 0 : i32
    return %c0_i32, %c0_i32_0 : i32, i32
  }
  func.func @transform_3(%arg0: i32, %arg1: i32) -> (i32, i32) {
    %c0_i32 = arith.constant 0 : i32
    %c0_i32_0 = arith.constant 0 : i32
    %c0_i32_1 = arith.constant 0 : i32
    return %c0_i32, %c0_i32_0 : i32, i32
  }
  func.func @transform_4(%arg0: i32, %arg1: i32) -> (i32, i32) {
    %c0_i32 = arith.constant 0 : i32
    %c0_i32_0 = arith.constant 0 : i32
    %c0_i32_1 = arith.constant 0 : i32
    return %c0_i32, %c0_i32_0 : i32, i32
  }
  func.func @transform_5(%arg0: i32, %arg1: i32) -> (i32, i32) {
    %c0_i32 = arith.constant 0 : i32
    %c0_i32_0 = arith.constant 0 : i32
    return %c0_i32, %arg1 : i32, i32
  }
  func.func @transform_6(%arg0: i32, %arg1: i32) -> (i32, i32) {
    %c0_i32 = arith.constant 0 : i32
    %c0_i32_0 = arith.constant 0 : i32
    return %c0_i32, %arg1 : i32, i32
  }
  func.func @transform_7(%arg0: i32, %arg1: i32) -> (i32, i32) {
    %c0_i32 = arith.constant 0 : i32
    %c0_i32_0 = arith.constant 0 : i32
    return %arg1, %c0_i32 : i32, i32
  }
  func.func @transform_8(%arg0: i32, %arg1: i32) -> (i32, i32) {
    %c0_i32 = arith.constant 0 : i32
    %c0_i32_0 = arith.constant 0 : i32
    %c0_i32_1 = arith.constant 0 : i32
    return %c0_i32, %c0_i32_0 : i32, i32
  }
  func.func @transform_9(%arg0: i32, %arg1: i32) -> (i32, i32) {
    %c0_i32 = arith.constant 0 : i32
    %c0_i32_0 = arith.constant 0 : i32
    return %arg0, %c0_i32 : i32, i32
  }
}

module attributes {stable_mosaic.version = 11 : i64} {
  func.func @fused_residual_mlp_kernel(%arg0: i32, %arg1: i32, %arg2: memref<64x32xf32, #tpu.memory_space<vmem>>, %arg3: memref<1x32xf32, #tpu.memory_space<vmem>>, %arg4: memref<1x32xf32, #tpu.memory_space<vmem>>, %arg5: memref<1x32xf32, #tpu.memory_space<vmem>>, %arg6: memref<1x32xf32, #tpu.memory_space<vmem>>, %arg7: memref<32x128xbf16, #tpu.memory_space<vmem>>, %arg8: memref<1x128xf32, #tpu.memory_space<vmem>>, %arg9: memref<128x32xbf16, #tpu.memory_space<vmem>>, %arg10: memref<1x32xf32, #tpu.memory_space<vmem>>, %arg11: memref<64x32xf32, #tpu.memory_space<vmem>>, %arg12: memref<64x32xbf16, #tpu.memory_space<vmem>>, %arg13: memref<64x32xf32, #tpu.memory_space<vmem>>) attributes {dimension_semantics = [#tpu.dimension_semantics<parallel>, #tpu.dimension_semantics<arbitrary>], iteration_bounds = array<i64: 2, 1>, scalar_prefetch = 0 : i64, scratch_operands = 2 : i64, tpu.core_type = #tpu.core_type<tc>, window_params = [{transform_indices = @transform_0, window_bounds = array<i64: 64, 32>}, {pipeline_mode = #tpu.pipeline_mode<synchronous>, transform_indices = @transform_1, window_bounds = array<i64: 1, 32>}, {pipeline_mode = #tpu.pipeline_mode<synchronous>, transform_indices = @transform_2, window_bounds = array<i64: 1, 32>}, {pipeline_mode = #tpu.pipeline_mode<synchronous>, transform_indices = @transform_3, window_bounds = array<i64: 1, 32>}, {pipeline_mode = #tpu.pipeline_mode<synchronous>, transform_indices = @transform_4, window_bounds = array<i64: 1, 32>}, {transform_indices = @transform_5, window_bounds = array<i64: 32, 128>}, {transform_indices = @transform_6, window_bounds = array<i64: 1, 128>}, {transform_indices = @transform_7, window_bounds = array<i64: 128, 32>}, {pipeline_mode = #tpu.pipeline_mode<synchronous>, transform_indices = @transform_8, window_bounds = array<i64: 1, 32>}, {transform_indices = @transform_9, window_bounds = array<i64: 64, 32>}]} {
    %c0_i32 = arith.constant 0 : i32
    %0 = arith.cmpi eq, %arg1, %c0_i32 : i32
    %1 = arith.extui %0 : i1 to i32
    %c0_i32_0 = arith.constant 0 : i32
    %2 = arith.cmpi ne, %1, %c0_i32_0 : i32
    scf.if %2 {
      %c0_19 = arith.constant 0 : index
      %c0_20 = arith.constant 0 : index
      %31 = vector.load %arg2[%c0_19, %c0_20] : memref<64x32xf32, #tpu.memory_space<vmem>>, vector<64x32xf32>
      %c0_21 = arith.constant 0 : index
      %c0_22 = arith.constant 0 : index
      %32 = vector.load %arg3[%c0_21, %c0_22] : memref<1x32xf32, #tpu.memory_space<vmem>>, vector<1x32xf32>
      %c0_23 = arith.constant 0 : index
      %c0_24 = arith.constant 0 : index
      %33 = vector.load %arg4[%c0_23, %c0_24] : memref<1x32xf32, #tpu.memory_space<vmem>>, vector<1x32xf32>
      %cst_25 = arith.constant dense<0.000000e+00> : vector<64xf32>
      %34 = vector.multi_reduction <add>, %31, %cst_25 [1] : vector<64x32xf32> to vector<64xf32>
      %35 = vector.shape_cast %34 : vector<64xf32> to vector<64x1xf32>
      %cst_26 = arith.constant 3.200000e+01 : f32
      %36 = vector.broadcast %cst_26 : f32 to vector<64x1xf32>
      %37 = arith.divf %35, %36 : vector<64x1xf32>
      %38 = vector.broadcast %37 : vector<64x1xf32> to vector<64x32xf32>
      %39 = arith.subf %31, %38 : vector<64x32xf32>
      %40 = arith.mulf %39, %39 : vector<64x32xf32>
      %cst_27 = arith.constant dense<0.000000e+00> : vector<64xf32>
      %41 = vector.multi_reduction <add>, %40, %cst_27 [1] : vector<64x32xf32> to vector<64xf32>
      %42 = vector.shape_cast %41 : vector<64xf32> to vector<64x1xf32>
      %cst_28 = arith.constant 3.200000e+01 : f32
      %43 = vector.broadcast %cst_28 : f32 to vector<64x1xf32>
      %44 = arith.divf %42, %43 : vector<64x1xf32>
      %45 = vector.broadcast %37 : vector<64x1xf32> to vector<64x32xf32>
      %46 = arith.subf %31, %45 : vector<64x32xf32>
      %cst_29 = arith.constant 9.99999974E-6 : f32
      %47 = vector.broadcast %cst_29 : f32 to vector<64x1xf32>
      %48 = arith.addf %44, %47 : vector<64x1xf32>
      %49 = math.rsqrt %48 : vector<64x1xf32>
      %50 = vector.broadcast %49 : vector<64x1xf32> to vector<64x32xf32>
      %51 = arith.mulf %46, %50 : vector<64x32xf32>
      %52 = vector.broadcast %32 : vector<1x32xf32> to vector<64x32xf32>
      %53 = arith.mulf %51, %52 : vector<64x32xf32>
      %54 = vector.broadcast %33 : vector<1x32xf32> to vector<64x32xf32>
      %55 = arith.addf %53, %54 : vector<64x32xf32>
      %56 = arith.addf %31, %55 : vector<64x32xf32>
      %c0_30 = arith.constant 0 : index
      %c0_31 = arith.constant 0 : index
      %57 = vector.load %arg5[%c0_30, %c0_31] : memref<1x32xf32, #tpu.memory_space<vmem>>, vector<1x32xf32>
      %c0_32 = arith.constant 0 : index
      %c0_33 = arith.constant 0 : index
      %58 = vector.load %arg6[%c0_32, %c0_33] : memref<1x32xf32, #tpu.memory_space<vmem>>, vector<1x32xf32>
      %cst_34 = arith.constant dense<0.000000e+00> : vector<64xf32>
      %59 = vector.multi_reduction <add>, %56, %cst_34 [1] : vector<64x32xf32> to vector<64xf32>
      %60 = vector.shape_cast %59 : vector<64xf32> to vector<64x1xf32>
      %cst_35 = arith.constant 3.200000e+01 : f32
      %61 = vector.broadcast %cst_35 : f32 to vector<64x1xf32>
      %62 = arith.divf %60, %61 : vector<64x1xf32>
      %63 = vector.broadcast %62 : vector<64x1xf32> to vector<64x32xf32>
      %64 = arith.subf %56, %63 : vector<64x32xf32>
      %65 = arith.mulf %64, %64 : vector<64x32xf32>
      %cst_36 = arith.constant dense<0.000000e+00> : vector<64xf32>
      %66 = vector.multi_reduction <add>, %65, %cst_36 [1] : vector<64x32xf32> to vector<64xf32>
      %67 = vector.shape_cast %66 : vector<64xf32> to vector<64x1xf32>
      %cst_37 = arith.constant 3.200000e+01 : f32
      %68 = vector.broadcast %cst_37 : f32 to vector<64x1xf32>
      %69 = arith.divf %67, %68 : vector<64x1xf32>
      %70 = vector.broadcast %62 : vector<64x1xf32> to vector<64x32xf32>
      %71 = arith.subf %56, %70 : vector<64x32xf32>
      %cst_38 = arith.constant 9.99999974E-6 : f32
      %72 = vector.broadcast %cst_38 : f32 to vector<64x1xf32>
      %73 = arith.addf %69, %72 : vector<64x1xf32>
      %74 = math.rsqrt %73 : vector<64x1xf32>
      %75 = vector.broadcast %74 : vector<64x1xf32> to vector<64x32xf32>
      %76 = arith.mulf %71, %75 : vector<64x32xf32>
      %77 = vector.broadcast %57 : vector<1x32xf32> to vector<64x32xf32>
      %78 = arith.mulf %76, %77 : vector<64x32xf32>
      %79 = vector.broadcast %58 : vector<1x32xf32> to vector<64x32xf32>
      %80 = arith.addf %78, %79 : vector<64x32xf32>
      %81 = arith.truncf %80 : vector<64x32xf32> to vector<64x32xbf16>
      %c0_39 = arith.constant 0 : index
      %c0_40 = arith.constant 0 : index
      %82 = vector.load %arg12[%c0_39, %c0_40] : memref<64x32xbf16, #tpu.memory_space<vmem>>, vector<64x32xbf16>
      tpu.vector_store %arg12[%c0_39, %c0_40], %81 {strides = array<i32>} : memref<64x32xbf16, #tpu.memory_space<vmem>>, vector<64x32xbf16>,
      %c0_41 = arith.constant 0 : index
      %c0_42 = arith.constant 0 : index
      %83 = vector.load %arg10[%c0_41, %c0_42] : memref<1x32xf32, #tpu.memory_space<vmem>>, vector<1x32xf32>
      %84 = vector.broadcast %83 : vector<1x32xf32> to vector<64x32xf32>
      %85 = arith.addf %56, %84 : vector<64x32xf32>
      %c0_43 = arith.constant 0 : index
      %c0_44 = arith.constant 0 : index
      %86 = vector.load %arg13[%c0_43, %c0_44] : memref<64x32xf32, #tpu.memory_space<vmem>>, vector<64x32xf32>
      tpu.vector_store %arg13[%c0_43, %c0_44], %85 {strides = array<i32>} : memref<64x32xf32, #tpu.memory_space<vmem>>, vector<64x32xf32>,
    } else {
    }
    %c0 = arith.constant 0 : index
    %c0_1 = arith.constant 0 : index
    %3 = vector.load %arg12[%c0, %c0_1] : memref<64x32xbf16, #tpu.memory_space<vmem>>, vector<64x32xbf16>
    %c0_2 = arith.constant 0 : index
    %c0_3 = arith.constant 0 : index
    %4 = vector.load %arg7[%c0_2, %c0_3] : memref<32x128xbf16, #tpu.memory_space<vmem>>, vector<32x128xbf16>
    %cst = arith.constant dense<0.000000e+00> : vector<64x128xf32>
    %5 = tpu.matmul %3, %4, %cst {dimension_numbers = #tpu.dot_dimension_numbers<[1], [0], [0], [1], [0, 0, 1, 1], [], []>} : vector<64x32xbf16>, vector<32x128xbf16>, vector<64x128xf32> -> vector<64x128xf32>
    %c0_4 = arith.constant 0 : index
    %c0_5 = arith.constant 0 : index
    %6 = vector.load %arg8[%c0_4, %c0_5] : memref<1x128xf32, #tpu.memory_space<vmem>>, vector<1x128xf32>
    %7 = vector.broadcast %6 : vector<1x128xf32> to vector<64x128xf32>
    %8 = arith.addf %5, %7 : vector<64x128xf32>
    %cst_6 = arith.constant 5.000000e-01 : f32
    %9 = vector.broadcast %cst_6 : f32 to vector<64x128xf32>
    %10 = arith.mulf %9, %8 : vector<64x128xf32>
    %cst_7 = arith.constant 4.471500e-02 : f32
    %11 = vector.broadcast %cst_7 : f32 to vector<64x128xf32>
    %12 = arith.mulf %11, %8 : vector<64x128xf32>
    %13 = arith.mulf %12, %8 : vector<64x128xf32>
    %14 = arith.mulf %13, %8 : vector<64x128xf32>
    %15 = arith.addf %8, %14 : vector<64x128xf32>
    %cst_8 = arith.constant 0.797884583 : f32
    %16 = vector.broadcast %cst_8 : f32 to vector<64x128xf32>
    %17 = arith.mulf %16, %15 : vector<64x128xf32>
    %18 = math.tanh %17 : vector<64x128xf32>
    %cst_9 = arith.constant 1.000000e+00 : f32
    %19 = vector.broadcast %cst_9 : f32 to vector<64x128xf32>
    %20 = arith.addf %19, %18 : vector<64x128xf32>
    %21 = arith.mulf %10, %20 : vector<64x128xf32>
    %c0_10 = arith.constant 0 : index
    %c0_11 = arith.constant 0 : index
    %22 = vector.load %arg13[%c0_10, %c0_11] : memref<64x32xf32, #tpu.memory_space<vmem>>, vector<64x32xf32>
    %23 = arith.truncf %21 : vector<64x128xf32> to vector<64x128xbf16>
    %c0_12 = arith.constant 0 : index
    %c0_13 = arith.constant 0 : index
    %24 = vector.load %arg9[%c0_12, %c0_13] : memref<128x32xbf16, #tpu.memory_space<vmem>>, vector<128x32xbf16>
    %cst_14 = arith.constant dense<0.000000e+00> : vector<64x32xf32>
    %25 = tpu.matmul %23, %24, %cst_14 {dimension_numbers = #tpu.dot_dimension_numbers<[1], [0], [0], [1], [0, 0, 1, 1], [], []>} : vector<64x128xbf16>, vector<128x32xbf16>, vector<64x32xf32> -> vector<64x32xf32>
    %26 = arith.addf %22, %25 : vector<64x32xf32>
    %c0_15 = arith.constant 0 : index
    %c0_16 = arith.constant 0 : index
    %27 = vector.load %arg13[%c0_15, %c0_16] : memref<64x32xf32, #tpu.memory_space<vmem>>, vector<64x32xf32>
    tpu.vector_store %arg13[%c0_15, %c0_16], %26 {strides = array<i32>} : memref<64x32xf32, #tpu.memory_space<vmem>>, vector<64x32xf32>,
    %c0_i32_17 = arith.constant 0 : i32
    %28 = arith.cmpi eq, %arg1, %c0_i32_17 : i32
    %29 = arith.extui %28 : i1 to i32
    %c0_i32_18 = arith.constant 0 : i32
    %30 = arith.cmpi ne, %29, %c0_i32_18 : i32
    scf.if %30 {
      %c0_19 = arith.constant 0 : index
      %c0_20 = arith.constant 0 : index
      %31 = vector.load %arg13[%c0_19, %c0_20] : memref<64x32xf32, #tpu.memory_space<vmem>>, vector<64x32xf32>
      %c0_21 = arith.constant 0 : index
      %c0_22 = arith.constant 0 : index
      %32 = vector.load %arg11[%c0_21, %c0_22] : memref<64x32xf32, #tpu.memory_space<vmem>>, vector<64x32xf32>
      tpu.vector_store %arg11[%c0_21, %c0_22], %31 {strides = array<i32>} : memref<64x32xf32, #tpu.memory_space<vmem>>, vector<64x32xf32>,
    } else {
    }
    return
  }
  func.func @transform_0(%arg0: i32, %arg1: i32) -> (i32, i32) {
    %c0_i32 = arith.constant 0 : i32
    %c0_i32_0 = arith.constant 0 : i32
    return %arg0, %c0_i32 : i32, i32
  }
  func.func @transform_1(%arg0: i32, %arg1: i32) -> (i32, i32) {
    %c0_i32 = arith.constant 0 : i32
    %c0_i32_0 = arith.constant 0 : i32
    %c0_i32_1 = arith.constant 0 : i32
    return %c0_i32, %c0_i32_0 : i32, i32
  }
  func.func @transform_2(%arg0: i32, %arg1: i32) -> (i32, i32) {
    %c0_i32 = arith.constant 0 : i32
    %c0_i32_0 = arith.constant 0 : i32
    %c0_i32_1 = arith.constant 0 : i32
    return %c0_i32, %c0_i32_0 : i32, i32
  }
  func.func @transform_3(%arg0: i32, %arg1: i32) -> (i32, i32) {
    %c0_i32 = arith.constant 0 : i32
    %c0_i32_0 = arith.constant 0 : i32
    %c0_i32_1 = arith.constant 0 : i32
    return %c0_i32, %c0_i32_0 : i32, i32
  }
  func.func @transform_4(%arg0: i32, %arg1: i32) -> (i32, i32) {
    %c0_i32 = arith.constant 0 : i32
    %c0_i32_0 = arith.constant 0 : i32
    %c0_i32_1 = arith.constant 0 : i32
    return %c0_i32, %c0_i32_0 : i32, i32
  }
  func.func @transform_5(%arg0: i32, %arg1: i32) -> (i32, i32) {
    %c0_i32 = arith.constant 0 : i32
    %c0_i32_0 = arith.constant 0 : i32
    return %c0_i32, %arg1 : i32, i32
  }
  func.func @transform_6(%arg0: i32, %arg1: i32) -> (i32, i32) {
    %c0_i32 = arith.constant 0 : i32
    %c0_i32_0 = arith.constant 0 : i32
    return %c0_i32, %arg1 : i32, i32
  }
  func.func @transform_7(%arg0: i32, %arg1: i32) -> (i32, i32) {
    %c0_i32 = arith.constant 0 : i32
    %c0_i32_0 = arith.constant 0 : i32
    return %arg1, %c0_i32 : i32, i32
  }
  func.func @transform_8(%arg0: i32, %arg1: i32) -> (i32, i32) {
    %c0_i32 = arith.constant 0 : i32
    %c0_i32_0 = arith.constant 0 : i32
    %c0_i32_1 = arith.constant 0 : i32
    return %c0_i32, %c0_i32_0 : i32, i32
  }
  func.func @transform_9(%arg0: i32, %arg1: i32) -> (i32, i32) {
    %c0_i32 = arith.constant 0 : i32
    %c0_i32_0 = arith.constant 0 : i32
    return %arg0, %c0_i32 : i32, i32
  }
}

</mosaic_0001>

<bundles_post_ra>
// kernel: tpu_custom_call.1
= control target key start
LH: loop header
LB: loop body
LE: loop exit
PB: predicated region body
PF: predicated region fallthrough
CT: control target
= control target key end

     0   :  { %s1427_s30 = smov 0   ;;  %s1429_s10 = smov 0   ;;  %s1786_s0 = inlined_call_operand.vmem [shape: f32[128,32], index: 0, kind: input, shape index: {}]   ;;  %s1787_s1 = inlined_call_operand.vmem [shape: f32[1,32], index: 1, kind: input, shape index: {}]   ;;  %s1788_s2 = inlined_call_operand.vmem [shape: f32[1,32], index: 2, kind: input, shape index: {}]   ;;  %s1789_s3 = inlined_call_operand.vmem [shape: f32[1,32], index: 3, kind: input, shape index: {}]   ;;  %s1790_s4 = inlined_call_operand.vmem [shape: f32[1,32], index: 4, kind: input, shape index: {}]   ;;  %s1791_s5 = inlined_call_operand.vmem [shape: bf16[32,128], index: 5, kind: input, shape index: {}]   ;;  %s1792_s6 = inlined_call_operand.vmem [shape: f32[1,128], index: 6, kind: input, shape index: {}]   ;;  %s1793_s7 = inlined_call_operand.vmem [shape: bf16[128,32], index: 7, kind: input, shape index: {}]   ;;  %s1794_s8 = inlined_call_operand.vmem [shape: f32[1,32], index: 8, kind: input, shape index: {}]   ;;  %s1795_s9 = inlined_call_operand.vmem [shape: f32[128,32], index: 9, kind: output, shape index: {}]  }
   0x1   :  { %s1431_s11 = smov 0  }
   0x2 LB: > { %s31_s12 = sadd.s32 1, %s1371_s10  ;;  %p1190_p0 = scmp.ge.s32.totalorder %s1375_s11, 1  ;;  %s1375_s11 = sphi %s1431_s11, %s19_s11   ;;  %s1371_s10 = sphi %s1429_s10, %s1797_s10   ;;  %s1367_s30 = sphi %s1427_s30, %s1796_s30  }
   0x3   : > { %p33_p1 = scmp.ge.s32.totalorder %s31_s12, 2  ;;  %p328_p2 = scmp.lt.s32.totalorder %s1375_s11, 3 }
   0x5   : > { %s1799_s12 = smov (%p33_p1, %s31_s12), 0  ;;  %p329_p3 = pnand %p1190_p0, %p328_p2 }
   0x6   : > { %s1191_s13 = sshll.u32 (!%p329_p3), %s1367_s30, 3  ;;  %vm416_vm0 = vcmask (!%p329_p3), 261120  }
   0x7   : > { %332 = sbr.rel (%p329_p3) target bundleno = 1143 (0x477), region = 56  ;;  %p377_p4 = scmp.lt.s32.totalorder (!%p329_p3), %s1191_s13, 15 }
   0xe   : > { %s1801_s13 = smov (!%p377_p4, %s1191_s13), 15 }
   0xf   : > { %s1192_s14 = sshll.u32 %s1801_s13, 3 }
  0x10   : > { %s380_s17 = scalar_lea.vmem %s1786_s0, %s1192_s14  ;;  %s1755_s20 = scalar_lea.vmem %s1795_s9, %s1192_s14 }
  0x11   : > { %v1453_v0 = vld [vmem:[%s380_s17] sm:$0xff]  ;;  %v1455_v1 = vld [vmem:[%s380_s17 + $0x10] sm:$0xff]  ;;  %v1457_v2 = vld [vmem:[%s380_s17 + $0x8] sm:$0xff] }
  0x12   : > { %v417_v3 = vsel %vm416_vm0, %v1453_v0, 0.0  ;;  %v423_v4 = vsel %vm416_vm0, %v1455_v1, 0.0  ;;  %v1463_v5 = vld [vmem:[%s380_s17 + $0x18] sm:$0xff]  ;;  %v420_v6 = vsel %vm416_vm0, %v1457_v2, 0.0  ;;  %v1469_v8 = vld [vmem:[%s380_s17 + $0x20] sm:$0xff]  ;;  %v1471_v9 = vld [vmem:[%s380_s17 + $0x28] sm:$0xff] }
  0x13   : > { %418 = vadd.xlane.f32.xlu0 %v417_v3  ;;  %424 = vadd.xlane.f32.xlu1 %v423_v4  ;;  %v426_v7 = vsel %vm416_vm0, %v1463_v5, 0.0  ;;  %v429_v10 = vsel %vm416_vm0, %v1469_v8, 0.0  ;;  %v432_v11 = vsel %vm416_vm0, %v1471_v9, 0.0  ;;  %v1477_v12 = vld [vmem:[%s380_s17 + $0x30] sm:$0xff]  ;;  %v1479_v13 = vld [vmem:[%s380_s17 + $0x38] sm:$0xff] }
  0x14   : > { %v435_v14 = vsel %vm416_vm0, %v1477_v12, 0.0  ;;  %v438_v15 = vsel %vm416_vm0, %v1479_v13, 0.0 }
  0x17   : > { %421 = vadd.xlane.f32.xlu0 %v420_v6  ;;  %427 = vadd.xlane.f32.xlu1 %v426_v7 }
  0x1b   : > { %430 = vadd.xlane.f32.xlu0 %v429_v10  ;;  %433 = vadd.xlane.f32.xlu1 %v432_v11 }
  0x1f   : > { %436 = vadd.xlane.f32.xlu0 %v435_v14  ;;  %439 = vadd.xlane.f32.xlu1 %v438_v15 }
  0xa0   : > { %v419_v16 = vpop.xlane.xlu0 %418  ;;  %v425_v17 = vpop.xlane.xlu1 %424 }
  0xa1   : > { %v442_v18 = vmul.f32 0.03125, %v419_v16  ;;  %v444_v19 = vmul.f32 0.03125, %v425_v17 }
  0xa3   : > { %v1486_v20 = vsub.f32 %v1453_v0, %v442_v18  ;;  %v1489_v21 = vsub.f32 %v1455_v1, %v444_v19 }
  0xa4   : > { %v422_v22 = vpop.xlane.xlu0 %421  ;;  %v428_v23 = vpop.xlane.xlu1 %427 }
  0xa5   : > { %v443_v24 = vmul.f32 0.03125, %v422_v22  ;;  %v445_v25 = vmul.f32 0.03125, %v428_v23  ;;  %v458_v26 = vmul.f32 %v1486_v20, %v1486_v20  ;;  %v460_v27 = vmul.f32 %v1489_v21, %v1489_v21 }
  0xa7   : > { %v1496_v28 = vsub.f32 %v1457_v2, %v443_v24  ;;  %v1499_v29 = vsub.f32 %v1463_v5, %v445_v25  ;;  %v466_v30 = vsel %vm416_vm0, %v458_v26, 0.0  ;;  %v472_v33 = vsel %vm416_vm0, %v460_v27, 0.0  ;;  %v1536_v24 = vld [vmem:[%s1787_s1] ss:$0 sm:$0xff] }
  0xa8   : > { %467 = vadd.xlane.f32.xlu0 %v466_v30  ;;  %v431_v31 = vpop.xlane.xlu0 %430  ;;  %v434_v32 = vpop.xlane.xlu1 %433  ;;  %v1542_v30 = vld [vmem:[%s1788_s2] ss:$0 sm:$0xff] }
  0xa9   : > { %v446_v34 = vmul.f32 0.03125, %v431_v31  ;;  %v447_v35 = vmul.f32 0.03125, %v434_v32  ;;  %v459_v36 = vmul.f32 %v1496_v28, %v1496_v28  ;;  %v461_v37 = vmul.f32 %v1499_v29, %v1499_v29 }
  0xab   : > { %v1508_v38 = vsub.f32 %v1469_v8, %v446_v34  ;;  %v1511_v39 = vsub.f32 %v1471_v9, %v447_v35  ;;  %v469_v40 = vsel %vm416_vm0, %v459_v36, 0.0  ;;  %v475_v43 = vsel %vm416_vm0, %v461_v37, 0.0 }
  0xac   : > { %473 = vadd.xlane.f32.xlu0 %v472_v33  ;;  %470 = vadd.xlane.f32.xlu1 %v469_v40  ;;  %v437_v41 = vpop.xlane.xlu0 %436  ;;  %v440_v42 = vpop.xlane.xlu1 %439 }
  0xad   : > { %v448_v44 = vmul.f32 0.03125, %v437_v41  ;;  %v449_v45 = vmul.f32 0.03125, %v440_v42  ;;  %v462_v46 = vmul.f32 %v1508_v38, %v1508_v38  ;;  %v463_v47 = vmul.f32 %v1511_v39, %v1511_v39 }
  0xaf   : > { %v1520_v48 = vsub.f32 %v1477_v12, %v448_v44  ;;  %v1523_v49 = vsub.f32 %v1479_v13, %v449_v45  ;;  %v478_v50 = vsel %vm416_vm0, %v462_v46, 0.0  ;;  %v481_v51 = vsel %vm416_vm0, %v463_v47, 0.0 }
  0xb0   : > { %476 = vadd.xlane.f32.xlu1 %v475_v43  ;;  %479 = vadd.xlane.f32.xlu0 %v478_v50 }
  0xb1   : > { %v464_v52 = vmul.f32 %v1520_v48, %v1520_v48  ;;  %v465_v53 = vmul.f32 %v1523_v49, %v1523_v49 }
  0xb3   : > { %v484_v54 = vsel %vm416_vm0, %v464_v52, 0.0  ;;  %v487_v55 = vsel %vm416_vm0, %v465_v53, 0.0 }
  0xb4   : > { %482 = vadd.xlane.f32.xlu1 %v481_v51  ;;  %485 = vadd.xlane.f32.xlu0 %v484_v54 }
  0xb8   : > { %488 = vadd.xlane.f32.xlu1 %v487_v55 }
 0x135   : > { %v468_v56 = vpop.xlane.xlu0 %467 }
 0x136   : > { %v490_v57 = vmul.f32 0.03125, %v468_v56 }
 0x138   : > { %v498_v58 = vadd.f32 1e-05, %v490_v57 }
 0x139   : > { %v471_v59 = vpop.xlane.xlu1 %470  ;;  %v474_v60 = vpop.xlane.xlu0 %473 }
 0x13a   : > { %1305 = vrsqrt.f32 %v498_v58  ;;  %v491_v61 = vmul.f32 0.03125, %v471_v59  ;;  %v492_v62 = vmul.f32 0.03125, %v474_v60 }
 0x13c   : > { %v499_v63 = vadd.f32 1e-05, %v491_v61  ;;  %v500_v3 = vadd.f32 1e-05, %v492_v62 }
 0x13d   : > { %v477_v4 = vpop.xlane.xlu1 %476  ;;  %v480_v6 = vpop.xlane.xlu0 %479 }
 0x13e   : > { %1307 = vrsqrt.f32 %v499_v63  ;;  %v493_v7 = vmul.f32 0.03125, %v477_v4  ;;  %v494_v10 = vmul.f32 0.03125, %v480_v6 }
 0x13f   : > { %1309 = vrsqrt.f32 %v500_v3 }
 0x140   : > { %v501_v11 = vadd.f32 1e-05, %v493_v7  ;;  %v502_v14 = vadd.f32 1e-05, %v494_v10 }
 0x141   : > { %v483_v15 = vpop.xlane.xlu1 %482  ;;  %v486_v16 = vpop.xlane.xlu0 %485 }
 0x142   : > { %1311 = vrsqrt.f32 %v501_v11  ;;  %v495_v17 = vmul.f32 0.03125, %v483_v15  ;;  %v496_v18 = vmul.f32 0.03125, %v486_v16 }
 0x143   : > { %1313 = vrsqrt.f32 %v502_v14 }
 0x144   : > { %v1306_v19 = vpop.eup %1305  ;;  %v503_v22 = vadd.f32 1e-05, %v495_v17  ;;  %v504_v23 = vadd.f32 1e-05, %v496_v18 }
 0x145   : > { %v489_v25 = vpop.xlane.xlu1 %488  ;;  %v514_v26 = vmul.f32 %v1306_v19, %v1486_v20  ;;  %v1550_v20 = vld [vmem:[%s1794_s8] ss:$0 sm:$0xff] }
 0x146   : > { %1315 = vrsqrt.f32 %v503_v22  ;;  %v497_v27 = vmul.f32 0.03125, %v489_v25 }
 0x147   : > { %1317 = vrsqrt.f32 %v504_v23  ;;  %v528_v31 = vmul.f32 %v1536_v24, %v514_v26 }
 0x148   : > { %v1308_v32 = vpop.eup %1307  ;;  %v505_v33 = vadd.f32 1e-05, %v497_v27 }
 0x149   : > { %v1310_v34 = vpop.eup %1309  ;;  %v542_v35 = vadd.f32 %v1542_v30, %v528_v31  ;;  %v515_v36 = vmul.f32 %v1308_v32, %v1496_v28 }
 0x14a   : > { %1319 = vrsqrt.f32 %v505_v33  ;;  %v516_v37 = vmul.f32 %v1310_v34, %v1489_v21 }
 0x14b   : > { %v1554_v40 = vadd.f32 %v542_v35, %v1453_v0  ;;  %v529_v41 = vmul.f32 %v1536_v24, %v515_v36 }
 0x14c   : > { %v1312_v42 = vpop.eup %1311  ;;  %v530_v43 = vmul.f32 %v1536_v24, %v516_v37 }
 0x14d   : > { %v1314_v44 = vpop.eup %1313  ;;  %v560_v28 = vsel %vm416_vm0, %v1554_v40, 0.0  ;;  %v707_v45 = vadd.f32 %v1550_v20, %v1554_v40  ;;  %v543_v46 = vadd.f32 %v1542_v30, %v529_v41  ;;  %v517_v47 = vmul.f32 %v1312_v42, %v1499_v29 }
 0x14e   : > { %561 = vadd.xlane.f32.xlu0 %v560_v28  ;;  %v544_v0 = vadd.f32 %v1542_v30, %v530_v43  ;;  %v518_v21 = vmul.f32 %v1314_v44, %v1508_v38 }
 0x14f   : > { %715 = vst.msk [vmem:[#allocation3] sm:$0xff] %vm416_vm0, %v707_v45  ;;  %v551_v50 = vadd.f32 %v543_v46, %v1457_v2  ;;  %v531_v51 = vmul.f32 %v1536_v24, %v517_v47 }
 0x150   : > { %v1316_v52 = vpop.eup %1315  ;;  %v552_v53 = vadd.f32 %v544_v0, %v1455_v1  ;;  %v532_v54 = vmul.f32 %v1536_v24, %v518_v21 }
 0x151   : > { %v1318_v55 = vpop.eup %1317  ;;  %v563_v56 = vsel %vm416_vm0, %v551_v50, 0.0  ;;  %v708_v29 = vadd.f32 %v1550_v20, %v551_v50  ;;  %v545_v57 = vadd.f32 %v1542_v30, %v531_v51  ;;  %v519_v38 = vmul.f32 %v1316_v52, %v1511_v39 }
 0x152   : > { %564 = vadd.xlane.f32.xlu1 %v563_v56  ;;  %v566_v58 = vsel %vm416_vm0, %v552_v53, 0.0  ;;  %v709_v2 = vadd.f32 %v1550_v20, %v552_v53  ;;  %v546_v59 = vadd.f32 %v1542_v30, %v532_v54  ;;  %v520_v1 = vmul.f32 %v1318_v55, %v1520_v48 }
 0x153   : > { %716 = vst.msk [vmem:[#allocation3 + $0x8] sm:$0xff] %vm416_vm0, %v708_v29  ;;  %567 = vadd.xlane.f32.xlu0 %v566_v58  ;;  %v553_v60 = vadd.f32 %v545_v57, %v1463_v5  ;;  %v533_v61 = vmul.f32 %v1536_v24, %v519_v38 }
 0x154   : > { %v1320_v62 = vpop.eup %1319  ;;  %717 = vst.msk [vmem:[#allocation3 + $0x10] sm:$0xff] %vm416_vm0, %v709_v2  ;;  %v554_v39 = vadd.f32 %v546_v59, %v1469_v8  ;;  %v534_v63 = vmul.f32 %v1536_v24, %v520_v1  ;;  %v1295_v1 = vld [vmem:[%s1791_s5] sm:$0xff]  }
 0x155   : > { %v569_v3 = vsel %vm416_vm0, %v553_v60, 0.0  ;;  %v710_v4 = vadd.f32 %v1550_v20, %v553_v60  ;;  %v547_v48 = vadd.f32 %v1542_v30, %v533_v61  ;;  %v521_v6 = vmul.f32 %v1320_v62, %v1523_v49  ;;  %1235 = vmatprep.subr.bf16.mxu0 %v1295_v1 }
 0x156   : > { %570 = vadd.xlane.f32.xlu1 %v569_v3  ;;  %v572_v5 = vsel %vm416_vm0, %v554_v39, 0.0  ;;  %v711_v7 = vadd.f32 %v1550_v20, %v554_v39  ;;  %v548_v10 = vadd.f32 %v1542_v30, %v534_v63  ;;  %1236 = vmatpush3.bf16.msra.mxu0 %v1295_v1 }
 0x157   : > { %718 = vst.msk [vmem:[#allocation3 + $0x18] sm:$0xff] %vm416_vm0, %v710_v4  ;;  %573 = vadd.xlane.f32.xlu0 %v572_v5  ;;  %v555_v8 = vadd.f32 %v547_v48, %v1471_v9  ;;  %v535_v11 = vmul.f32 %v1536_v24, %v521_v6 }
 0x158   : > { %719 = vst.msk [vmem:[#allocation3 + $0x20] sm:$0xff] %vm416_vm0, %v711_v7  ;;  %v556_v14 = vadd.f32 %v548_v10, %v1477_v12 }
 0x159   : > { %v575_v49 = vsel %vm416_vm0, %v555_v8, 0.0  ;;  %v712_v15 = vadd.f32 %v1550_v20, %v555_v8  ;;  %v549_v16 = vadd.f32 %v1542_v30, %v535_v11 }
 0x15a   : > { %576 = vadd.xlane.f32.xlu1 %v575_v49  ;;  %v578_v17 = vsel %vm416_vm0, %v556_v14, 0.0  ;;  %v713_v18 = vadd.f32 %v1550_v20, %v556_v14 }
 0x15b   : > { %720 = vst.msk [vmem:[#allocation3 + $0x28] sm:$0xff] %vm416_vm0, %v712_v15  ;;  %579 = vadd.xlane.f32.xlu0 %v578_v17  ;;  %v557_v9 = vadd.f32 %v549_v16, %v1479_v13 }
 0x15c   : > { %721 = vst.msk [vmem:[#allocation3 + $0x30] sm:$0xff] %vm416_vm0, %v713_v18 }
 0x15d   : > { %v581_v12 = vsel %vm416_vm0, %v557_v9, 0.0  ;;  %v714_v19 = vadd.f32 %v1550_v20, %v557_v9 }
 0x15e   : > { %582 = vadd.xlane.f32.xlu1 %v581_v12 }
 0x15f   : > { %722 = vst.msk [vmem:[#allocation3 + $0x38] sm:$0xff] %vm416_vm0, %v714_v19 }
 0x1db   : > { %v562_v22 = vpop.xlane.xlu0 %561 }
 0x1dc   : > { %v584_v23 = vmul.f32 0.03125, %v562_v22 }
 0x1de   : > { %v1609_v24 = vsub.f32 %v1554_v40, %v584_v23 }
 0x1df   : > { %v565_v25 = vpop.xlane.xlu1 %564 }
 0x1e0   : > { %v585_v26 = vmul.f32 0.03125, %v565_v25  ;;  %v568_v27 = vpop.xlane.xlu0 %567  ;;  %v600_v13 = vmul.f32 %v1609_v24, %v1609_v24  ;;  %v1197_v25 = vld [vmem:[%s1789_s3] ss:$0 sm:$0xff] }
 0x1e1   : > { %v586_v30 = vmul.f32 0.03125, %v568_v27 }
 0x1e2   : > { %v1613_v31 = vsub.f32 %v551_v50, %v585_v26  ;;  %v608_v32 = vsel %vm416_vm0, %v600_v13, 0.0 }
 0x1e3   : > { %v1616_v33 = vsub.f32 %v552_v53, %v586_v30  ;;  %v571_v34 = vpop.xlane.xlu1 %570  ;;  %609 = vadd.xlane.f32.xlu0 %v608_v32 }
 0x1e4   : > { %v587_v35 = vmul.f32 0.03125, %v571_v34  ;;  %v574_v36 = vpop.xlane.xlu0 %573  ;;  %v601_v20 = vmul.f32 %v1613_v31, %v1613_v31 }
 0x1e5   : > { %v588_v37 = vmul.f32 0.03125, %v574_v36  ;;  %v602_v40 = vmul.f32 %v1616_v33, %v1616_v33 }
 0x1e6   : > { %v1622_v41 = vsub.f32 %v553_v60, %v587_v35  ;;  %v611_v42 = vsel %vm416_vm0, %v601_v20, 0.0  ;;  %v1296_v60 = vld [vmem:[%s1791_s5 + $0x8] sm:$0xff]   ;;  %v1198_v35 = vld [vmem:[%s1790_s4] ss:$0 sm:$0xff] }
 0x1e7   : > { %v1625_v43 = vsub.f32 %v554_v39, %v588_v37  ;;  %612 = vadd.xlane.f32.xlu1 %v611_v42  ;;  %v577_v44 = vpop.xlane.xlu1 %576  ;;  %v614_v28 = vsel %vm416_vm0, %v602_v40, 0.0  ;;  %1237 = vmatprep.subr.bf16.mxu0 %v1296_v60 }
 0x1e8   : > { %v589_v45 = vmul.f32 0.03125, %v577_v44  ;;  %615 = vadd.xlane.f32.xlu0 %v614_v28  ;;  %v580_v46 = vpop.xlane.xlu0 %579  ;;  %v603_v47 = vmul.f32 %v1622_v41, %v1622_v41  ;;  %1238 = vmatpush3.bf16.msra.mxu0 %v1296_v60 }
 0x1e9   : > { %v590_v0 = vmul.f32 0.03125, %v580_v46  ;;  %v604_v21 = vmul.f32 %v1625_v43, %v1625_v43 }
 0x1ea   : > { %v1632_v50 = vsub.f32 %v555_v8, %v589_v45  ;;  %v617_v51 = vsel %vm416_vm0, %v603_v47, 0.0 }
 0x1eb   : > { %v1635_v52 = vsub.f32 %v556_v14, %v590_v0  ;;  %618 = vadd.xlane.f32.xlu1 %v617_v51  ;;  %v583_v53 = vpop.xlane.xlu1 %582  ;;  %v620_v54 = vsel %vm416_vm0, %v604_v21, 0.0 }
 0x1ec   : > { %v591_v55 = vmul.f32 0.03125, %v583_v53  ;;  %621 = vadd.xlane.f32.xlu0 %v620_v54  ;;  %v605_v56 = vmul.f32 %v1632_v50, %v1632_v50 }
 0x1ed   : > { %v606_v29 = vmul.f32 %v1635_v52, %v1635_v52 }
 0x1ee   : > { %v1642_v57 = vsub.f32 %v557_v9, %v591_v55  ;;  %v623_v38 = vsel %vm416_vm0, %v605_v56, 0.0 }
 0x1ef   : > { %624 = vadd.xlane.f32.xlu1 %v623_v38  ;;  %v626_v58 = vsel %vm416_vm0, %v606_v29, 0.0 }
 0x1f0   : > { %627 = vadd.xlane.f32.xlu0 %v626_v58  ;;  %v607_v2 = vmul.f32 %v1642_v57, %v1642_v57 }
 0x1f2   : > { %v629_v59 = vsel %vm416_vm0, %v607_v2, 0.0 }
 0x1f3   : > { %630 = vadd.xlane.f32.xlu1 %v629_v59 }
 0x270   : > { %v610_v61 = vpop.xlane.xlu0 %609 }
 0x271   : > { %v632_v62 = vmul.f32 0.03125, %v610_v61 }
 0x273   : > { %v640_v39 = vadd.f32 1e-05, %v632_v62 }
 0x274   : > { %v613_v63 = vpop.xlane.xlu1 %612 }
 0x275   : > { %1321 = vrsqrt.f32 %v640_v39  ;;  %v633_v3 = vmul.f32 0.03125, %v613_v63  ;;  %v616_v4 = vpop.xlane.xlu0 %615  ;;  %v1298_v63 = vld [vmem:[%s1793_s7 + $0x8] sm:$0xff]  }
 0x276   : > { %v634_v48 = vmul.f32 0.03125, %v616_v4  ;;  %v1300_v4 = vld [vmem:[%s1793_s7 + $0x18] sm:$0xff]  }
 0x277   : > { %v641_v6 = vadd.f32 1e-05, %v633_v3  ;;  %v1299_v3 = vld [vmem:[%s1793_s7 + $0x10] sm:$0xff]  }
 0x278   : > { %v642_v5 = vadd.f32 1e-05, %v634_v48  ;;  %v619_v7 = vpop.xlane.xlu1 %618  ;;  %v1301_v48 = vld [vmem:[%s1793_s7 + $0x20] sm:$0xff]  }
 0x279   : > { %1323 = vrsqrt.f32 %v641_v6  ;;  %v635_v10 = vmul.f32 0.03125, %v619_v7  ;;  %v622_v8 = vpop.xlane.xlu0 %621  ;;  %v1302_v6 = vld [vmem:[%s1793_s7 + $0x28] sm:$0xff]   ;;  %v1304_v7 = vld [vmem:[%s1793_s7 + $0x38] sm:$0xff]  }
 0x27a   : > { %1325 = vrsqrt.f32 %v642_v5  ;;  %v636_v11 = vmul.f32 0.03125, %v622_v8  ;;  %v1303_v5 = vld [vmem:[%s1793_s7 + $0x30] sm:$0xff]  }
 0x27b   : > { %v643_v14 = vadd.f32 1e-05, %v635_v10  ;;  %v1200_v10 = vld [vmem:[%s1792_s6] ss:$0 sm:$0xff] }
 0x27c   : > { %v644_v49 = vadd.f32 1e-05, %v636_v11  ;;  %v625_v15 = vpop.xlane.xlu1 %624 }
 0x27d   : > { %1327 = vrsqrt.f32 %v643_v14  ;;  %v637_v16 = vmul.f32 0.03125, %v625_v15  ;;  %v628_v17 = vpop.xlane.xlu0 %627 }
 0x27e   : > { %1329 = vrsqrt.f32 %v644_v49  ;;  %v638_v18 = vmul.f32 0.03125, %v628_v17 }
 0x27f   : > { %v1322_v9 = vpop.eup %1321  ;;  %v645_v12 = vadd.f32 1e-05, %v637_v16 }
 0x280   : > { %v656_v19 = vmul.f32 %v1322_v9, %v1609_v24  ;;  %v646_v22 = vadd.f32 1e-05, %v638_v18  ;;  %v631_v23 = vpop.xlane.xlu1 %630 }
 0x281   : > { %1331 = vrsqrt.f32 %v645_v12  ;;  %v639_v26 = vmul.f32 0.03125, %v631_v23 }
 0x282   : > { %1333 = vrsqrt.f32 %v646_v22  ;;  %v670_v32 = vmul.f32 %v1197_v25, %v656_v19 }
 0x283   : > { %v1324_v27 = vpop.eup %1323  ;;  %v647_v13 = vadd.f32 1e-05, %v639_v26 }
 0x284   : > { %v1326_v30 = vpop.eup %1325  ;;  %v657_v34 = vmul.f32 %v1324_v27, %v1613_v31  ;;  %v684_v40 = vadd.f32 %v1198_v35, %v670_v32 }
 0x285   : > { %v658_v24 = vmul.f32 %v1326_v30, %v1616_v33  ;;  %1335 = vrsqrt.f32 %v647_v13 }
 0x286   : > { %v671_v36 = vmul.f32 %v1197_v25, %v657_v34 }
 0x287   : > { %v1328_v20 = vpop.eup %1327  ;;  %v672_v44 = vmul.f32 %v1197_v25, %v658_v24 }
 0x288   : > { %v1330_v37 = vpop.eup %1329  ;;  %v685_v42 = vadd.f32 %v1198_v35, %v671_v36  ;;  %v659_v28 = vmul.f32 %v1328_v20, %v1622_v41 }
 0x289   : > { %v660_v45 = vmul.f32 %v1330_v37, %v1625_v43  ;;  %v686_v21 = vadd.f32 %v1198_v35, %v672_v44 }
 0x28a   : > { %v692_v46 = vpack.c.bf16 %v685_v42, %v684_v40  ;;  %v673_v47 = vmul.f32 %v1197_v25, %v659_v28 }
 0x28b   : > { %v1332_v31 = vpop.eup %1331  ;;  %v674_v33 = vmul.f32 %v1197_v25, %v660_v45 }
 0x28c   : > { %v1334_v0 = vpop.eup %1333  ;;  %696 = vst.msk [vmem:[#allocation2] sm:$0xff] %vm416_vm0, %v692_v46  ;;  %v687_v51 = vadd.f32 %v1198_v35, %v673_v47  ;;  %v661_v53 = vmul.f32 %v1332_v31, %v1632_v50 }
 0x28d   : > { %v662_v54 = vmul.f32 %v1334_v0, %v1635_v52  ;;  %v688_v41 = vadd.f32 %v1198_v35, %v674_v33 }
 0x28e   : > { %v693_v55 = vpack.c.bf16 %v687_v51, %v686_v21  ;;  %v675_v56 = vmul.f32 %v1197_v25, %v661_v53 }
 0x28f   : > { %v1336_v29 = vpop.eup %1335  ;;  %v676_v38 = vmul.f32 %v1197_v25, %v662_v54 }
 0x290   : > { %697 = vst.msk [vmem:[#allocation2 + $0x8] sm:$0xff] %vm416_vm0, %v693_v55  ;;  %v689_v43 = vadd.f32 %v1198_v35, %v675_v56  ;;  %v663_v58 = vmul.f32 %v1336_v29, %v1642_v57  ;;  %v1297_v57 = vld [vmem:[%s1793_s7] sm:$0xff]  }
 0x291   : > { %v690_v60 = vadd.f32 %v1198_v35, %v676_v38  ;;  %1247 = vmatprep.subr.bf16.mxu1 %v1297_v57 }
 0x292   : > { %v694_v2 = vpack.c.bf16 %v689_v43, %v688_v41  ;;  %v677_v59 = vmul.f32 %v1197_v25, %v663_v58  ;;  %1248 = vmatpush3.bf16.msra.mxu1 %v1297_v57 }
 0x293   : > { %v723_v1 = vld [vmem:[#allocation2] sm:$0xff]  ;;  %1249 = vmatprep.subr.bf16.mxu1 %v1298_v63 }
 0x294   : > { %698 = vst.msk [vmem:[#allocation2 + $0x10] sm:$0xff] %vm416_vm0, %v694_v2  ;;  %v691_v61 = vadd.f32 %v1198_v35, %v677_v59  ;;  %1239 = vmatprep.mubr.msk.bf16.mxu0 %vm416_vm0, %v723_v1 }
 0x296   : > { %v695_v50 = vpack.c.bf16 %v691_v61, %v690_v60  ;;  %1250 = vmatpush3.bf16.msra.mxu1 %v1298_v63 }
 0x297   : > { %v724_v52 = vld [vmem:[#allocation2 + $0x8] sm:$0xff]  ;;  %1251 = vmatprep.subr.bf16.mxu1 %v1299_v3 }
 0x298   : > { %699 = vst.msk [vmem:[#allocation2 + $0x18] sm:$0xff] %vm416_vm0, %v695_v50  ;;  %1240 = vmatmul.mubr.msk.bf16.vlgmr.msra.gmra.mrb[0].mxu0 %vm416_vm0, %v724_v52 }
 0x29a   : > { %1252 = vmatpush3.bf16.msra.mxu1 %v1299_v3 }
 0x29b   : > { %v725_v62 = vld [vmem:[#allocation2 + $0x10] sm:$0xff]  ;;  %1253 = vmatprep.subr.bf16.mxu1 %v1300_v4 }
 0x29c   : > { %1243 = vmatprep.mubr.msk.bf16.mxu0 %vm416_vm0, %v725_v62 }
 0x29e   : > { %1254 = vmatpush3.bf16.msra.mxu1 %v1300_v4 }
 0x29f   : > { %v726_v39 = vld [vmem:[#allocation2 + $0x18] sm:$0xff]  ;;  %1255 = vmatprep.subr.bf16.mxu1 %v1301_v48 }
 0x2a0   : > { %1244 = vmatmul.mubr.msk.bf16.gmra.mrb[4].mxu0 %vm416_vm0, %v726_v39 }
 0x2a2   : > { %1256 = vmatpush3.bf16.msra.mxu1 %v1301_v48 }
 0x2a3   : > { %1257 = vmatprep.subr.bf16.mxu1 %v1302_v6 }
 0x2a6   : > { %1258 = vmatpush3.bf16.msra.mxu1 %v1302_v6 }
 0x2a7   : > { %1259 = vmatprep.subr.bf16.mxu1 %v1303_v5 }
 0x2aa   : > { %1260 = vmatpush3.bf16.msra.mxu1 %v1303_v5 }
 0x2ab   : > { %1261 = vmatprep.subr.bf16.mxu1 %v1304_v7 }
 0x2ae   : > { %1262 = vmatpush3.bf16.msra.mxu1 %v1304_v7 }
 0x36b   : > { %v1241_v8 = vpop.f32.mrb[0].mxu0 }
 0x36c   : > { %v1704_v11 = vadd.f32 %v1241_v8, %v1200_v10  ;;  %v797_v14 = vpop.f32.mrb[1].mxu0 }
 0x36d   : > { %v1706_v49 = vadd.f32 %v1200_v10, %v797_v14  ;;  %v1242_v15 = vpop.f32.mrb[2].mxu0 }
 0x36e   : > { %v838_v16 = vmul.f32 0.044715, %v1704_v11  ;;  %v1709_v17 = vadd.f32 %v1242_v15, %v1200_v10  ;;  %v800_v18 = vpop.f32.mrb[3].mxu0  ;;  %v830_v7 = vmul.f32 0.5, %v1704_v11 }
 0x36f   : > { %v836_v9 = vmul.f32 0.044715, %v1706_v49  ;;  %v1712_v12 = vadd.f32 %v1200_v10, %v800_v18  ;;  %v828_v14 = vmul.f32 0.5, %v1706_v49 }
 0x370   : > { %v846_v19 = vmul.f32 %v838_v16, %v1704_v11  ;;  %v839_v22 = vmul.f32 0.044715, %v1709_v17 }
 0x371   : > { %v837_v23 = vmul.f32 0.044715, %v1712_v12  ;;  %v844_v25 = vmul.f32 %v836_v9, %v1706_v49  ;;  %v829_v15 = vmul.f32 0.5, %v1712_v12 }
 0x372   : > { %v854_v26 = vmul.f32 %v846_v19, %v1704_v11  ;;  %v847_v27 = vmul.f32 %v839_v22, %v1709_v17 }
 0x373   : > { %v1245_v13 = vpop.f32.mrb[4].mxu0  ;;  %v845_v30 = vmul.f32 %v837_v23, %v1712_v12  ;;  %v852_v32 = vmul.f32 %v844_v25, %v1706_v49 }
 0x374   : > { %v855_v34 = vmul.f32 %v847_v27, %v1709_v17  ;;  %v1723_v35 = vadd.f32 %v1245_v13, %v1200_v10  ;;  %v813_v24 = vpop.f32.mrb[5].mxu0  ;;  %v862_v36 = vadd.f32 %v854_v26, %v1704_v11 }
 0x375   : > { %v1726_v20 = vadd.f32 %v1200_v10, %v813_v24  ;;  %v1246_v37 = vpop.f32.mrb[6].mxu0  ;;  %v853_v40 = vmul.f32 %v845_v30, %v1712_v12  ;;  %v860_v42 = vadd.f32 %v852_v32, %v1706_v49 }
 0x376   : > { %v842_v44 = vmul.f32 0.044715, %v1723_v35  ;;  %v825_v28 = vadd.f32 %v1246_v37, %v1200_v10  ;;  %v816_v45 = vpop.f32.mrb[7].mxu0  ;;  %v863_v46 = vadd.f32 %v855_v34, %v1709_v17  ;;  %v870_v47 = vmul.f32 0.7978846, %v862_v36 }
 0x377   : > { %v840_v31 = vmul.f32 0.044715, %v1726_v20  ;;  %v817_v0 = vadd.f32 %v1200_v10, %v816_v45  ;;  %v861_v21 = vadd.f32 %v853_v40, %v1712_v12  ;;  %v868_v51 = vmul.f32 0.7978846, %v860_v42 }
 0x378   : > { %v850_v33 = vmul.f32 %v842_v44, %v1723_v35  ;;  %v843_v53 = vmul.f32 0.044715, %v825_v28  ;;  %v871_v54 = vmul.f32 0.7978846, %v863_v46  ;;  %1337 = vtanh.f32 %v870_v47  ;;  %v902_v47 = vld [vmem:[#allocation3 + $0x10] sm:$0xff] }
 0x379   : > { %v848_v55 = vmul.f32 %v840_v31, %v1726_v20  ;;  %v841_v56 = vmul.f32 0.044715, %v817_v0  ;;  %v869_v29 = vmul.f32 0.7978846, %v861_v21  ;;  %1339 = vtanh.f32 %v868_v51  ;;  %v900_v51 = vld [vmem:[#allocation3] sm:$0xff] }
 0x37a   : > { %v858_v41 = vmul.f32 %v850_v33, %v1723_v35  ;;  %v851_v43 = vmul.f32 %v843_v53, %v825_v28  ;;  %1341 = vtanh.f32 %v871_v54  ;;  %v831_v10 = vmul.f32 0.5, %v1709_v17  ;;  %v903_v33 = vld [vmem:[#allocation3 + $0x18] sm:$0xff] }
 0x37b   : > { %v856_v38 = vmul.f32 %v848_v55, %v1726_v20  ;;  %v849_v58 = vmul.f32 %v841_v56, %v817_v0  ;;  %1343 = vtanh.f32 %v869_v29  ;;  %v834_v17 = vmul.f32 0.5, %v1723_v35  ;;  %v906_v56 = vld [vmem:[#allocation3 + $0x30] sm:$0xff] }
 0x37c   : > { %v859_v2 = vmul.f32 %v851_v43, %v825_v28  ;;  %v866_v59 = vadd.f32 %v858_v41, %v1723_v35  ;;  %v835_v49 = vmul.f32 0.5, %v825_v28  ;;  %v832_v12 = vmul.f32 0.5, %v1726_v20  ;;  %v904_v43 = vld [vmem:[#allocation3 + $0x20] sm:$0xff] }
 0x37d   : > { %v857_v1 = vmul.f32 %v849_v58, %v817_v0  ;;  %v864_v60 = vadd.f32 %v856_v38, %v1726_v20  ;;  %v833_v24 = vmul.f32 0.5, %v817_v0 }
 0x37e   : > { %v867_v61 = vadd.f32 %v859_v2, %v825_v28  ;;  %v874_v50 = vmul.f32 0.7978846, %v866_v59  ;;  %v907_v59 = vld [vmem:[#allocation3 + $0x38] sm:$0xff] }
 0x37f   : > { %v865_v52 = vadd.f32 %v857_v1, %v817_v0  ;;  %v872_v62 = vmul.f32 0.7978846, %v864_v60  ;;  %v901_v0 = vld [vmem:[#allocation3 + $0x8] sm:$0xff] }
 0x380   : > { %v875_v39 = vmul.f32 0.7978846, %v867_v61  ;;  %1345 = vtanh.f32 %v874_v50  ;;  %v905_v50 = vld [vmem:[#allocation3 + $0x28] sm:$0xff] }
 0x381   : > { %v873_v57 = vmul.f32 0.7978846, %v865_v52  ;;  %1347 = vtanh.f32 %v872_v62 }
 0x382   : > { %v1338_v63 = vpop.eup %1337  ;;  %1349 = vtanh.f32 %v875_v39 }
 0x383   : > { %v1340_v3 = vpop.eup %1339  ;;  %v886_v4 = vadd.f32 1.0, %v1338_v63  ;;  %1351 = vtanh.f32 %v873_v57 }
 0x384   : > { %v1342_v48 = vpop.eup %1341  ;;  %v884_v6 = vadd.f32 1.0, %v1340_v3 }
 0x385   : > { %v1344_v5 = vpop.eup %1343  ;;  %v887_v8 = vadd.f32 1.0, %v1342_v48  ;;  %v894_v18 = vmul.f32 %v886_v4, %v830_v7 }
 0x386   : > { %v885_v16 = vadd.f32 1.0, %v1344_v5  ;;  %v892_v19 = vmul.f32 %v884_v6, %v828_v14 }
 0x387   : > { %v895_v9 = vmul.f32 %v887_v8, %v831_v10 }
 0x388   : > { %v893_v22 = vmul.f32 %v885_v16, %v829_v15 }
 0x389   : > { %v909_v23 = vpack.c.bf16 %v895_v9, %v894_v18 }
 0x38a   : > { %v1346_v25 = vpop.eup %1345  ;;  %v908_v26 = vpack.c.bf16 %v893_v22, %v892_v19 }
 0x38b   : > { %v1348_v27 = vpop.eup %1347  ;;  %v890_v13 = vadd.f32 1.0, %v1346_v25 }
 0x38c   : > { %v1350_v30 = vpop.eup %1349  ;;  %1263 = vmatprep.mubr.bf16.mxu1 %v908_v26  ;;  %v888_v11 = vadd.f32 1.0, %v1348_v27 }
 0x38d   : > { %v1352_v32 = vpop.eup %1351  ;;  %1264 = vmatmul.mubr.bf16.vlgmr.msra.gmra.mrb[0].mxu1 %v909_v23  ;;  %v891_v34 = vadd.f32 1.0, %v1350_v30  ;;  %v898_v37 = vmul.f32 %v890_v13, %v834_v17 }
 0x38e   : > { %v889_v36 = vadd.f32 1.0, %v1352_v32  ;;  %v896_v42 = vmul.f32 %v888_v11, %v832_v12 }
 0x38f   : > { %v899_v40 = vmul.f32 %v891_v34, %v835_v49 }
 0x390   : > { %v897_v44 = vmul.f32 %v889_v36, %v833_v24 }
 0x391   : > { %v911_v45 = vpack.c.bf16 %v899_v40, %v898_v37 }
 0x392   : > { %v910_v46 = vpack.c.bf16 %v897_v44, %v896_v42 }
 0x394   : > { %1267 = vmatprep.mubr.bf16.mxu1 %v910_v46 }
 0x395   : > { %1268 = vmatmul.mubr.bf16.gmra.mrb[4].mxu1 %v911_v45 }
 0x460   : > { %v1265_v31 = vpop.f32.mrb[0].mxu1 }
 0x461   : > { %v1043_v21 = vadd.f32 %v1265_v31, %v902_v47  ;;  %v1010_v35 = vpop.f32.mrb[1].mxu1 }
 0x462   : > { %v1041_v28 = vadd.f32 %v1010_v35, %v900_v51  ;;  %v1266_v53 = vpop.f32.mrb[2].mxu1 }
 0x463   : > { %1051 = vst.msk [vmem:[#allocation3 + $0x10] sm:$0xff] %vm416_vm0, %v1043_v21  ;;  %v1044_v20 = vadd.f32 %v1266_v53, %v903_v33  ;;  %v1013_v54 = vpop.f32.mrb[3].mxu1 }
 0x464   : > { %1049 = vst.msk [vmem:[#allocation3] sm:$0xff] %vm416_vm0, %v1041_v28  ;;  %v1042_v55 = vadd.f32 %v1013_v54, %v901_v0 }
 0x465   : > { %1052 = vst.msk [vmem:[#allocation3 + $0x18] sm:$0xff] %vm416_vm0, %v1044_v20 }
 0x466   : > { %1050 = vst.msk [vmem:[#allocation3 + $0x8] sm:$0xff] %vm416_vm0, %v1042_v55 }
 0x468   : > { %v1269_v29 = vpop.f32.mrb[4].mxu1 }
 0x469   : > { %v1047_v41 = vadd.f32 %v1269_v29, %v906_v56  ;;  %v1026_v38 = vpop.f32.mrb[5].mxu1 }
 0x46a   : > { %v1062_v58 = vld [vmem:[#allocation3 + $0x10] sm:$0xff]  ;;  %v1045_v2 = vadd.f32 %v1026_v38, %v904_v43  ;;  %v1270_v1 = vpop.f32.mrb[6].mxu1 }
 0x46b   : > { %1070 = vst.msk [vmem:[%s1755_s20 + $0x10] sm:$0xff] %vm416_vm0, %v1062_v58  ;;  %v1060_v60 = vld [vmem:[#allocation3] sm:$0xff]  ;;  %1055 = vst.msk [vmem:[#allocation3 + $0x30] sm:$0xff] %vm416_vm0, %v1047_v41  ;;  %v1048_v61 = vadd.f32 %v1270_v1, %v907_v59  ;;  %v1029_v52 = vpop.f32.mrb[7].mxu1 }
 0x46c   : > { %1068 = vst.msk [vmem:[%s1755_s20] sm:$0xff] %vm416_vm0, %v1060_v60  ;;  %v1063_v62 = vld [vmem:[#allocation3 + $0x18] sm:$0xff]  ;;  %1053 = vst.msk [vmem:[#allocation3 + $0x20] sm:$0xff] %vm416_vm0, %v1045_v2  ;;  %v1046_v39 = vadd.f32 %v1029_v52, %v905_v50 }
 0x46d   : > { %1071 = vst.msk [vmem:[%s1755_s20 + $0x18] sm:$0xff] %vm416_vm0, %v1063_v62  ;;  %v1061_v57 = vld [vmem:[#allocation3 + $0x8] sm:$0xff]  ;;  %1056 = vst.msk [vmem:[#allocation3 + $0x38] sm:$0xff] %vm416_vm0, %v1048_v61 }
 0x46e   : > { %1069 = vst.msk [vmem:[%s1755_s20 + $0x8] sm:$0xff] %vm416_vm0, %v1061_v57  ;;  %1054 = vst.msk [vmem:[#allocation3 + $0x28] sm:$0xff] %vm416_vm0, %v1046_v39 }
 0x472   : > { %v1066_v63 = vld [vmem:[#allocation3 + $0x30] sm:$0xff] }
 0x473   : > { %1074 = vst.msk [vmem:[%s1755_s20 + $0x30] sm:$0xff] %vm416_vm0, %v1066_v63  ;;  %v1064_v3 = vld [vmem:[#allocation3 + $0x20] sm:$0xff] }
 0x474   : > { %1072 = vst.msk [vmem:[%s1755_s20 + $0x20] sm:$0xff] %vm416_vm0, %v1064_v3  ;;  %v1067_v4 = vld [vmem:[#allocation3 + $0x38] sm:$0xff] }
 0x475   : > { %1075 = vst.msk [vmem:[%s1755_s20 + $0x38] sm:$0xff] %vm416_vm0, %v1067_v4  ;;  %v1065_v48 = vld [vmem:[#allocation3 + $0x28] sm:$0xff] }
 0x476   : > { %1073 = vst.msk [vmem:[%s1755_s20 + $0x28] sm:$0xff] %vm416_vm0, %v1065_v48 }
 0x477 PF: > { %s19_s11 = sadd.s32 1, %s1375_s11   ;;  %s1796_s30 = smov %s1371_s10 }
 0x478   : > { %p16_p5 = scmp.ge.s32.totalorder %s19_s11, 4   ;;  %s1797_s10 = smov %s1799_s12 }
 0x47a   :  { %18 = sbr.rel (!%p16_p5) target bundleno = 2 (0x2), region = 103 }

// kernel: tpu_custom_call.1
= control target key start
LH: loop header
LB: loop body
LE: loop exit
PB: predicated region body
PF: predicated region fallthrough
CT: control target
= control target key end

     0   :  { %s1427_s30 = smov 0   ;;  %s1429_s10 = smov 0   ;;  %s1786_s0 = inlined_call_operand.vmem [shape: f32[128,32], index: 0, kind: input, shape index: {}]   ;;  %s1787_s1 = inlined_call_operand.vmem [shape: f32[1,32], index: 1, kind: input, shape index: {}]   ;;  %s1788_s2 = inlined_call_operand.vmem [shape: f32[1,32], index: 2, kind: input, shape index: {}]   ;;  %s1789_s3 = inlined_call_operand.vmem [shape: f32[1,32], index: 3, kind: input, shape index: {}]   ;;  %s1790_s4 = inlined_call_operand.vmem [shape: f32[1,32], index: 4, kind: input, shape index: {}]   ;;  %s1791_s5 = inlined_call_operand.vmem [shape: bf16[32,128], index: 5, kind: input, shape index: {}]   ;;  %s1792_s6 = inlined_call_operand.vmem [shape: f32[1,128], index: 6, kind: input, shape index: {}]   ;;  %s1793_s7 = inlined_call_operand.vmem [shape: bf16[128,32], index: 7, kind: input, shape index: {}]   ;;  %s1794_s8 = inlined_call_operand.vmem [shape: f32[1,32], index: 8, kind: input, shape index: {}]   ;;  %s1795_s9 = inlined_call_operand.vmem [shape: f32[128,32], index: 9, kind: output, shape index: {}]  }
   0x1   :  { %s1431_s11 = smov 0  }
   0x2 LB: > { %s31_s12 = sadd.s32 1, %s1371_s10  ;;  %p1190_p0 = scmp.ge.s32.totalorder %s1375_s11, 1  ;;  %s1375_s11 = sphi %s1431_s11, %s19_s11   ;;  %s1371_s10 = sphi %s1429_s10, %s1797_s10   ;;  %s1367_s30 = sphi %s1427_s30, %s1796_s30  }
   0x3   : > { %p33_p1 = scmp.ge.s32.totalorder %s31_s12, 2  ;;  %p328_p2 = scmp.lt.s32.totalorder %s1375_s11, 3 }
   0x5   : > { %s1799_s12 = smov (%p33_p1, %s31_s12), 0  ;;  %p329_p3 = pnand %p1190_p0, %p328_p2 }
   0x6   : > { %s1191_s13 = sshll.u32 (!%p329_p3), %s1367_s30, 3  ;;  %vm416_vm0 = vcmask (!%p329_p3), 261120  }
   0x7   : > { %332 = sbr.rel (%p329_p3) target bundleno = 1143 (0x477), region = 56  ;;  %p377_p4 = scmp.lt.s32.totalorder (!%p329_p3), %s1191_s13, 15 }
   0xe   : > { %s1801_s13 = smov (!%p377_p4, %s1191_s13), 15 }
   0xf   : > { %s1192_s14 = sshll.u32 %s1801_s13, 3 }
  0x10   : > { %s380_s17 = scalar_lea.vmem %s1786_s0, %s1192_s14  ;;  %s1755_s20 = scalar_lea.vmem %s1795_s9, %s1192_s14 }
  0x11   : > { %v1453_v0 = vld [vmem:[%s380_s17] sm:$0xff]  ;;  %v1455_v1 = vld [vmem:[%s380_s17 + $0x10] sm:$0xff]  ;;  %v1457_v2 = vld [vmem:[%s380_s17 + $0x8] sm:$0xff] }
  0x12   : > { %v417_v3 = vsel %vm416_vm0, %v1453_v0, 0.0  ;;  %v423_v4 = vsel %vm416_vm0, %v1455_v1, 0.0  ;;  %v1463_v5 = vld [vmem:[%s380_s17 + $0x18] sm:$0xff]  ;;  %v420_v6 = vsel %vm416_vm0, %v1457_v2, 0.0  ;;  %v1469_v8 = vld [vmem:[%s380_s17 + $0x20] sm:$0xff]  ;;  %v1471_v9 = vld [vmem:[%s380_s17 + $0x28] sm:$0xff] }
  0x13   : > { %418 = vadd.xlane.f32.xlu0 %v417_v3  ;;  %424 = vadd.xlane.f32.xlu1 %v423_v4  ;;  %v426_v7 = vsel %vm416_vm0, %v1463_v5, 0.0  ;;  %v429_v10 = vsel %vm416_vm0, %v1469_v8, 0.0  ;;  %v432_v11 = vsel %vm416_vm0, %v1471_v9, 0.0  ;;  %v1477_v12 = vld [vmem:[%s380_s17 + $0x30] sm:$0xff]  ;;  %v1479_v13 = vld [vmem:[%s380_s17 + $0x38] sm:$0xff] }
  0x14   : > { %v435_v14 = vsel %vm416_vm0, %v1477_v12, 0.0  ;;  %v438_v15 = vsel %vm416_vm0, %v1479_v13, 0.0 }
  0x17   : > { %421 = vadd.xlane.f32.xlu0 %v420_v6  ;;  %427 = vadd.xlane.f32.xlu1 %v426_v7 }
  0x1b   : > { %430 = vadd.xlane.f32.xlu0 %v429_v10  ;;  %433 = vadd.xlane.f32.xlu1 %v432_v11 }
  0x1f   : > { %436 = vadd.xlane.f32.xlu0 %v435_v14  ;;  %439 = vadd.xlane.f32.xlu1 %v438_v15 }
  0xa0   : > { %v419_v16 = vpop.xlane.xlu0 %418  ;;  %v425_v17 = vpop.xlane.xlu1 %424 }
  0xa1   : > { %v442_v18 = vmul.f32 0.03125, %v419_v16  ;;  %v444_v19 = vmul.f32 0.03125, %v425_v17 }
  0xa3   : > { %v1486_v20 = vsub.f32 %v1453_v0, %v442_v18  ;;  %v1489_v21 = vsub.f32 %v1455_v1, %v444_v19 }
  0xa4   : > { %v422_v22 = vpop.xlane.xlu0 %421  ;;  %v428_v23 = vpop.xlane.xlu1 %427 }
  0xa5   : > { %v443_v24 = vmul.f32 0.03125, %v422_v22  ;;  %v445_v25 = vmul.f32 0.03125, %v428_v23  ;;  %v458_v26 = vmul.f32 %v1486_v20, %v1486_v20  ;;  %v460_v27 = vmul.f32 %v1489_v21, %v1489_v21 }
  0xa7   : > { %v1496_v28 = vsub.f32 %v1457_v2, %v443_v24  ;;  %v1499_v29 = vsub.f32 %v1463_v5, %v445_v25  ;;  %v466_v30 = vsel %vm416_vm0, %v458_v26, 0.0  ;;  %v472_v33 = vsel %vm416_vm0, %v460_v27, 0.0  ;;  %v1536_v24 = vld [vmem:[%s1787_s1] ss:$0 sm:$0xff] }
  0xa8   : > { %467 = vadd.xlane.f32.xlu0 %v466_v30  ;;  %v431_v31 = vpop.xlane.xlu0 %430  ;;  %v434_v32 = vpop.xlane.xlu1 %433  ;;  %v1542_v30 = vld [vmem:[%s1788_s2] ss:$0 sm:$0xff] }
  0xa9   : > { %v446_v34 = vmul.f32 0.03125, %v431_v31  ;;  %v447_v35 = vmul.f32 0.03125, %v434_v32  ;;  %v459_v36 = vmul.f32 %v1496_v28, %v1496_v28  ;;  %v461_v37 = vmul.f32 %v1499_v29, %v1499_v29 }
  0xab   : > { %v1508_v38 = vsub.f32 %v1469_v8, %v446_v34  ;;  %v1511_v39 = vsub.f32 %v1471_v9, %v447_v35  ;;  %v469_v40 = vsel %vm416_vm0, %v459_v36, 0.0  ;;  %v475_v43 = vsel %vm416_vm0, %v461_v37, 0.0 }
  0xac   : > { %473 = vadd.xlane.f32.xlu0 %v472_v33  ;;  %470 = vadd.xlane.f32.xlu1 %v469_v40  ;;  %v437_v41 = vpop.xlane.xlu0 %436  ;;  %v440_v42 = vpop.xlane.xlu1 %439 }
  0xad   : > { %v448_v44 = vmul.f32 0.03125, %v437_v41  ;;  %v449_v45 = vmul.f32 0.03125, %v440_v42  ;;  %v462_v46 = vmul.f32 %v1508_v38, %v1508_v38  ;;  %v463_v47 = vmul.f32 %v1511_v39, %v1511_v39 }
  0xaf   : > { %v1520_v48 = vsub.f32 %v1477_v12, %v448_v44  ;;  %v1523_v49 = vsub.f32 %v1479_v13, %v449_v45  ;;  %v478_v50 = vsel %vm416_vm0, %v462_v46, 0.0  ;;  %v481_v51 = vsel %vm416_vm0, %v463_v47, 0.0 }
  0xb0   : > { %476 = vadd.xlane.f32.xlu1 %v475_v43  ;;  %479 = vadd.xlane.f32.xlu0 %v478_v50 }
  0xb1   : > { %v464_v52 = vmul.f32 %v1520_v48, %v1520_v48  ;;  %v465_v53 = vmul.f32 %v1523_v49, %v1523_v49 }
  0xb3   : > { %v484_v54 = vsel %vm416_vm0, %v464_v52, 0.0  ;;  %v487_v55 = vsel %vm416_vm0, %v465_v53, 0.0 }
  0xb4   : > { %482 = vadd.xlane.f32.xlu1 %v481_v51  ;;  %485 = vadd.xlane.f32.xlu0 %v484_v54 }
  0xb8   : > { %488 = vadd.xlane.f32.xlu1 %v487_v55 }
 0x135   : > { %v468_v56 = vpop.xlane.xlu0 %467 }
 0x136   : > { %v490_v57 = vmul.f32 0.03125, %v468_v56 }
 0x138   : > { %v498_v58 = vadd.f32 1e-05, %v490_v57 }
 0x139   : > { %v471_v59 = vpop.xlane.xlu1 %470  ;;  %v474_v60 = vpop.xlane.xlu0 %473 }
 0x13a   : > { %1305 = vrsqrt.f32 %v498_v58  ;;  %v491_v61 = vmul.f32 0.03125, %v471_v59  ;;  %v492_v62 = vmul.f32 0.03125, %v474_v60 }
 0x13c   : > { %v499_v63 = vadd.f32 1e-05, %v491_v61  ;;  %v500_v3 = vadd.f32 1e-05, %v492_v62 }
 0x13d   : > { %v477_v4 = vpop.xlane.xlu1 %476  ;;  %v480_v6 = vpop.xlane.xlu0 %479 }
 0x13e   : > { %1307 = vrsqrt.f32 %v499_v63  ;;  %v493_v7 = vmul.f32 0.03125, %v477_v4  ;;  %v494_v10 = vmul.f32 0.03125, %v480_v6 }
 0x13f   : > { %1309 = vrsqrt.f32 %v500_v3 }
 0x140   : > { %v501_v11 = vadd.f32 1e-05, %v493_v7  ;;  %v502_v14 = vadd.f32 1e-05, %v494_v10 }
 0x141   : > { %v483_v15 = vpop.xlane.xlu1 %482  ;;  %v486_v16 = vpop.xlane.xlu0 %485 }
 0x142   : > { %1311 = vrsqrt.f32 %v501_v11  ;;  %v495_v17 = vmul.f32 0.03125, %v483_v15  ;;  %v496_v18 = vmul.f32 0.03125, %v486_v16 }
 0x143   : > { %1313 = vrsqrt.f32 %v502_v14 }
 0x144   : > { %v1306_v19 = vpop.eup %1305  ;;  %v503_v22 = vadd.f32 1e-05, %v495_v17  ;;  %v504_v23 = vadd.f32 1e-05, %v496_v18 }
 0x145   : > { %v489_v25 = vpop.xlane.xlu1 %488  ;;  %v514_v26 = vmul.f32 %v1306_v19, %v1486_v20  ;;  %v1550_v20 = vld [vmem:[%s1794_s8] ss:$0 sm:$0xff] }
 0x146   : > { %1315 = vrsqrt.f32 %v503_v22  ;;  %v497_v27 = vmul.f32 0.03125, %v489_v25 }
 0x147   : > { %1317 = vrsqrt.f32 %v504_v23  ;;  %v528_v31 = vmul.f32 %v1536_v24, %v514_v26 }
 0x148   : > { %v1308_v32 = vpop.eup %1307  ;;  %v505_v33 = vadd.f32 1e-05, %v497_v27 }
 0x149   : > { %v1310_v34 = vpop.eup %1309  ;;  %v542_v35 = vadd.f32 %v1542_v30, %v528_v31  ;;  %v515_v36 = vmul.f32 %v1308_v32, %v1496_v28 }
 0x14a   : > { %1319 = vrsqrt.f32 %v505_v33  ;;  %v516_v37 = vmul.f32 %v1310_v34, %v1489_v21 }
 0x14b   : > { %v1554_v40 = vadd.f32 %v542_v35, %v1453_v0  ;;  %v529_v41 = vmul.f32 %v1536_v24, %v515_v36 }
 0x14c   : > { %v1312_v42 = vpop.eup %1311  ;;  %v530_v43 = vmul.f32 %v1536_v24, %v516_v37 }
 0x14d   : > { %v1314_v44 = vpop.eup %1313  ;;  %v560_v28 = vsel %vm416_vm0, %v1554_v40, 0.0  ;;  %v707_v45 = vadd.f32 %v1550_v20, %v1554_v40  ;;  %v543_v46 = vadd.f32 %v1542_v30, %v529_v41  ;;  %v517_v47 = vmul.f32 %v1312_v42, %v1499_v29 }
 0x14e   : > { %561 = vadd.xlane.f32.xlu0 %v560_v28  ;;  %v544_v0 = vadd.f32 %v1542_v30, %v530_v43  ;;  %v518_v21 = vmul.f32 %v1314_v44, %v1508_v38 }
 0x14f   : > { %715 = vst.msk [vmem:[#allocation3] sm:$0xff] %vm416_vm0, %v707_v45  ;;  %v551_v50 = vadd.f32 %v543_v46, %v1457_v2  ;;  %v531_v51 = vmul.f32 %v1536_v24, %v517_v47 }
 0x150   : > { %v1316_v52 = vpop.eup %1315  ;;  %v552_v53 = vadd.f32 %v544_v0, %v1455_v1  ;;  %v532_v54 = vmul.f32 %v1536_v24, %v518_v21 }
 0x151   : > { %v1318_v55 = vpop.eup %1317  ;;  %v563_v56 = vsel %vm416_vm0, %v551_v50, 0.0  ;;  %v708_v29 = vadd.f32 %v1550_v20, %v551_v50  ;;  %v545_v57 = vadd.f32 %v1542_v30, %v531_v51  ;;  %v519_v38 = vmul.f32 %v1316_v52, %v1511_v39 }
 0x152   : > { %564 = vadd.xlane.f32.xlu1 %v563_v56  ;;  %v566_v58 = vsel %vm416_vm0, %v552_v53, 0.0  ;;  %v709_v2 = vadd.f32 %v1550_v20, %v552_v53  ;;  %v546_v59 = vadd.f32 %v1542_v30, %v532_v54  ;;  %v520_v1 = vmul.f32 %v1318_v55, %v1520_v48 }
 0x153   : > { %716 = vst.msk [vmem:[#allocation3 + $0x8] sm:$0xff] %vm416_vm0, %v708_v29  ;;  %567 = vadd.xlane.f32.xlu0 %v566_v58  ;;  %v553_v60 = vadd.f32 %v545_v57, %v1463_v5  ;;  %v533_v61 = vmul.f32 %v1536_v24, %v519_v38 }
 0x154   : > { %v1320_v62 = vpop.eup %1319  ;;  %717 = vst.msk [vmem:[#allocation3 + $0x10] sm:$0xff] %vm416_vm0, %v709_v2  ;;  %v554_v39 = vadd.f32 %v546_v59, %v1469_v8  ;;  %v534_v63 = vmul.f32 %v1536_v24, %v520_v1  ;;  %v1295_v1 = vld [vmem:[%s1791_s5] sm:$0xff]  }
 0x155   : > { %v569_v3 = vsel %vm416_vm0, %v553_v60, 0.0  ;;  %v710_v4 = vadd.f32 %v1550_v20, %v553_v60  ;;  %v547_v48 = vadd.f32 %v1542_v30, %v533_v61  ;;  %v521_v6 = vmul.f32 %v1320_v62, %v1523_v49  ;;  %1235 = vmatprep.subr.bf16.mxu0 %v1295_v1 }
 0x156   : > { %570 = vadd.xlane.f32.xlu1 %v569_v3  ;;  %v572_v5 = vsel %vm416_vm0, %v554_v39, 0.0  ;;  %v711_v7 = vadd.f32 %v1550_v20, %v554_v39  ;;  %v548_v10 = vadd.f32 %v1542_v30, %v534_v63  ;;  %1236 = vmatpush3.bf16.msra.mxu0 %v1295_v1 }
 0x157   : > { %718 = vst.msk [vmem:[#allocation3 + $0x18] sm:$0xff] %vm416_vm0, %v710_v4  ;;  %573 = vadd.xlane.f32.xlu0 %v572_v5  ;;  %v555_v8 = vadd.f32 %v547_v48, %v1471_v9  ;;  %v535_v11 = vmul.f32 %v1536_v24, %v521_v6 }
 0x158   : > { %719 = vst.msk [vmem:[#allocation3 + $0x20] sm:$0xff] %vm416_vm0, %v711_v7  ;;  %v556_v14 = vadd.f32 %v548_v10, %v1477_v12 }
 0x159   : > { %v575_v49 = vsel %vm416_vm0, %v555_v8, 0.0  ;;  %v712_v15 = vadd.f32 %v1550_v20, %v555_v8  ;;  %v549_v16 = vadd.f32 %v1542_v30, %v535_v11 }
 0x15a   : > { %576 = vadd.xlane.f32.xlu1 %v575_v49  ;;  %v578_v17 = vsel %vm416_vm0, %v556_v14, 0.0  ;;  %v713_v18 = vadd.f32 %v1550_v20, %v556_v14 }
 0x15b   : > { %720 = vst.msk [vmem:[#allocation3 + $0x28] sm:$0xff] %vm416_vm0, %v712_v15  ;;  %579 = vadd.xlane.f32.xlu0 %v578_v17  ;;  %v557_v9 = vadd.f32 %v549_v16, %v1479_v13 }
 0x15c   : > { %721 = vst.msk [vmem:[#allocation3 + $0x30] sm:$0xff] %vm416_vm0, %v713_v18 }
 0x15d   : > { %v581_v12 = vsel %vm416_vm0, %v557_v9, 0.0  ;;  %v714_v19 = vadd.f32 %v1550_v20, %v557_v9 }
 0x15e   : > { %582 = vadd.xlane.f32.xlu1 %v581_v12 }
 0x15f   : > { %722 = vst.msk [vmem:[#allocation3 + $0x38] sm:$0xff] %vm416_vm0, %v714_v19 }
 0x1db   : > { %v562_v22 = vpop.xlane.xlu0 %561 }
 0x1dc   : > { %v584_v23 = vmul.f32 0.03125, %v562_v22 }
 0x1de   : > { %v1609_v24 = vsub.f32 %v1554_v40, %v584_v23 }
 0x1df   : > { %v565_v25 = vpop.xlane.xlu1 %564 }
 0x1e0   : > { %v585_v26 = vmul.f32 0.03125, %v565_v25  ;;  %v568_v27 = vpop.xlane.xlu0 %567  ;;  %v600_v13 = vmul.f32 %v1609_v24, %v1609_v24  ;;  %v1197_v25 = vld [vmem:[%s1789_s3] ss:$0 sm:$0xff] }
 0x1e1   : > { %v586_v30 = vmul.f32 0.03125, %v568_v27 }
 0x1e2   : > { %v1613_v31 = vsub.f32 %v551_v50, %v585_v26  ;;  %v608_v32 = vsel %vm416_vm0, %v600_v13, 0.0 }
 0x1e3   : > { %v1616_v33 = vsub.f32 %v552_v53, %v586_v30  ;;  %v571_v34 = vpop.xlane.xlu1 %570  ;;  %609 = vadd.xlane.f32.xlu0 %v608_v32 }
 0x1e4   : > { %v587_v35 = vmul.f32 0.03125, %v571_v34  ;;  %v574_v36 = vpop.xlane.xlu0 %573  ;;  %v601_v20 = vmul.f32 %v1613_v31, %v1613_v31 }
 0x1e5   : > { %v588_v37 = vmul.f32 0.03125, %v574_v36  ;;  %v602_v40 = vmul.f32 %v1616_v33, %v1616_v33 }
 0x1e6   : > { %v1622_v41 = vsub.f32 %v553_v60, %v587_v35  ;;  %v611_v42 = vsel %vm416_vm0, %v601_v20, 0.0  ;;  %v1296_v60 = vld [vmem:[%s1791_s5 + $0x8] sm:$0xff]   ;;  %v1198_v35 = vld [vmem:[%s1790_s4] ss:$0 sm:$0xff] }
 0x1e7   : > { %v1625_v43 = vsub.f32 %v554_v39, %v588_v37  ;;  %612 = vadd.xlane.f32.xlu1 %v611_v42  ;;  %v577_v44 = vpop.xlane.xlu1 %576  ;;  %v614_v28 = vsel %vm416_vm0, %v602_v40, 0.0  ;;  %1237 = vmatprep.subr.bf16.mxu0 %v1296_v60 }
 0x1e8   : > { %v589_v45 = vmul.f32 0.03125, %v577_v44  ;;  %615 = vadd.xlane.f32.xlu0 %v614_v28  ;;  %v580_v46 = vpop.xlane.xlu0 %579  ;;  %v603_v47 = vmul.f32 %v1622_v41, %v1622_v41  ;;  %1238 = vmatpush3.bf16.msra.mxu0 %v1296_v60 }
 0x1e9   : > { %v590_v0 = vmul.f32 0.03125, %v580_v46  ;;  %v604_v21 = vmul.f32 %v1625_v43, %v1625_v43 }
 0x1ea   : > { %v1632_v50 = vsub.f32 %v555_v8, %v589_v45  ;;  %v617_v51 = vsel %vm416_vm0, %v603_v47, 0.0 }
 0x1eb   : > { %v1635_v52 = vsub.f32 %v556_v14, %v590_v0  ;;  %618 = vadd.xlane.f32.xlu1 %v617_v51  ;;  %v583_v53 = vpop.xlane.xlu1 %582  ;;  %v620_v54 = vsel %vm416_vm0, %v604_v21, 0.0 }
 0x1ec   : > { %v591_v55 = vmul.f32 0.03125, %v583_v53  ;;  %621 = vadd.xlane.f32.xlu0 %v620_v54  ;;  %v605_v56 = vmul.f32 %v1632_v50, %v1632_v50 }
 0x1ed   : > { %v606_v29 = vmul.f32 %v1635_v52, %v1635_v52 }
 0x1ee   : > { %v1642_v57 = vsub.f32 %v557_v9, %v591_v55  ;;  %v623_v38 = vsel %vm416_vm0, %v605_v56, 0.0 }
 0x1ef   : > { %624 = vadd.xlane.f32.xlu1 %v623_v38  ;;  %v626_v58 = vsel %vm416_vm0, %v606_v29, 0.0 }
 0x1f0   : > { %627 = vadd.xlane.f32.xlu0 %v626_v58  ;;  %v607_v2 = vmul.f32 %v1642_v57, %v1642_v57 }
 0x1f2   : > { %v629_v59 = vsel %vm416_vm0, %v607_v2, 0.0 }
 0x1f3   : > { %630 = vadd.xlane.f32.xlu1 %v629_v59 }
 0x270   : > { %v610_v61 = vpop.xlane.xlu0 %609 }
 0x271   : > { %v632_v62 = vmul.f32 0.03125, %v610_v61 }
 0x273   : > { %v640_v39 = vadd.f32 1e-05, %v632_v62 }
 0x274   : > { %v613_v63 = vpop.xlane.xlu1 %612 }
 0x275   : > { %1321 = vrsqrt.f32 %v640_v39  ;;  %v633_v3 = vmul.f32 0.03125, %v613_v63  ;;  %v616_v4 = vpop.xlane.xlu0 %615  ;;  %v1298_v63 = vld [vmem:[%s1793_s7 + $0x8] sm:$0xff]  }
 0x276   : > { %v634_v48 = vmul.f32 0.03125, %v616_v4  ;;  %v1300_v4 = vld [vmem:[%s1793_s7 + $0x18] sm:$0xff]  }
 0x277   : > { %v641_v6 = vadd.f32 1e-05, %v633_v3  ;;  %v1299_v3 = vld [vmem:[%s1793_s7 + $0x10] sm:$0xff]  }
 0x278   : > { %v642_v5 = vadd.f32 1e-05, %v634_v48  ;;  %v619_v7 = vpop.xlane.xlu1 %618  ;;  %v1301_v48 = vld [vmem:[%s1793_s7 + $0x20] sm:$0xff]  }
 0x279   : > { %1323 = vrsqrt.f32 %v641_v6  ;;  %v635_v10 = vmul.f32 0.03125, %v619_v7  ;;  %v622_v8 = vpop.xlane.xlu0 %621  ;;  %v1302_v6 = vld [vmem:[%s1793_s7 + $0x28] sm:$0xff]   ;;  %v1304_v7 = vld [vmem:[%s1793_s7 + $0x38] sm:$0xff]  }
 0x27a   : > { %1325 = vrsqrt.f32 %v642_v5  ;;  %v636_v11 = vmul.f32 0.03125, %v622_v8  ;;  %v1303_v5 = vld [vmem:[%s1793_s7 + $0x30] sm:$0xff]  }
 0x27b   : > { %v643_v14 = vadd.f32 1e-05, %v635_v10  ;;  %v1200_v10 = vld [vmem:[%s1792_s6] ss:$0 sm:$0xff] }
 0x27c   : > { %v644_v49 = vadd.f32 1e-05, %v636_v11  ;;  %v625_v15 = vpop.xlane.xlu1 %624 }
 0x27d   : > { %1327 = vrsqrt.f32 %v643_v14  ;;  %v637_v16 = vmul.f32 0.03125, %v625_v15  ;;  %v628_v17 = vpop.xlane.xlu0 %627 }
 0x27e   : > { %1329 = vrsqrt.f32 %v644_v49  ;;  %v638_v18 = vmul.f32 0.03125, %v628_v17 }
 0x27f   : > { %v1322_v9 = vpop.eup %1321  ;;  %v645_v12 = vadd.f32 1e-05, %v637_v16 }
 0x280   : > { %v656_v19 = vmul.f32 %v1322_v9, %v1609_v24  ;;  %v646_v22 = vadd.f32 1e-05, %v638_v18  ;;  %v631_v23 = vpop.xlane.xlu1 %630 }
 0x281   : > { %1331 = vrsqrt.f32 %v645_v12  ;;  %v639_v26 = vmul.f32 0.03125, %v631_v23 }
 0x282   : > { %1333 = vrsqrt.f32 %v646_v22  ;;  %v670_v32 = vmul.f32 %v1197_v25, %v656_v19 }
 0x283   : > { %v1324_v27 = vpop.eup %1323  ;;  %v647_v13 = vadd.f32 1e-05, %v639_v26 }
 0x284   : > { %v1326_v30 = vpop.eup %1325  ;;  %v657_v34 = vmul.f32 %v1324_v27, %v1613_v31  ;;  %v684_v40 = vadd.f32 %v1198_v35, %v670_v32 }
 0x285   : > { %v658_v24 = vmul.f32 %v1326_v30, %v1616_v33  ;;  %1335 = vrsqrt.f32 %v647_v13 }
 0x286   : > { %v671_v36 = vmul.f32 %v1197_v25, %v657_v34 }
 0x287   : > { %v1328_v20 = vpop.eup %1327  ;;  %v672_v44 = vmul.f32 %v1197_v25, %v658_v24 }
 0x288   : > { %v1330_v37 = vpop.eup %1329  ;;  %v685_v42 = vadd.f32 %v1198_v35, %v671_v36  ;;  %v659_v28 = vmul.f32 %v1328_v20, %v1622_v41 }
 0x289   : > { %v660_v45 = vmul.f32 %v1330_v37, %v1625_v43  ;;  %v686_v21 = vadd.f32 %v1198_v35, %v672_v44 }
 0x28a   : > { %v692_v46 = vpack.c.bf16 %v685_v42, %v684_v40  ;;  %v673_v47 = vmul.f32 %v1197_v25, %v659_v28 }
 0x28b   : > { %v1332_v31 = vpop.eup %1331  ;;  %v674_v33 = vmul.f32 %v1197_v25, %v660_v45 }
 0x28c   : > { %v1334_v0 = vpop.eup %1333  ;;  %696 = vst.msk [vmem:[#allocation2] sm:$0xff] %vm416_vm0, %v692_v46  ;;  %v687_v51 = vadd.f32 %v1198_v35, %v673_v47  ;;  %v661_v53 = vmul.f32 %v1332_v31, %v1632_v50 }
 0x28d   : > { %v662_v54 = vmul.f32 %v1334_v0, %v1635_v52  ;;  %v688_v41 = vadd.f32 %v1198_v35, %v674_v33 }
 0x28e   : > { %v693_v55 = vpack.c.bf16 %v687_v51, %v686_v21  ;;  %v675_v56 = vmul.f32 %v1197_v25, %v661_v53 }
 0x28f   : > { %v1336_v29 = vpop.eup %1335  ;;  %v676_v38 = vmul.f32 %v1197_v25, %v662_v54 }
 0x290   : > { %697 = vst.msk [vmem:[#allocation2 + $0x8] sm:$0xff] %vm416_vm0, %v693_v55  ;;  %v689_v43 = vadd.f32 %v1198_v35, %v675_v56  ;;  %v663_v58 = vmul.f32 %v1336_v29, %v1642_v57  ;;  %v1297_v57 = vld [vmem:[%s1793_s7] sm:$0xff]  }
 0x291   : > { %v690_v60 = vadd.f32 %v1198_v35, %v676_v38  ;;  %1247 = vmatprep.subr.bf16.mxu1 %v1297_v57 }
 0x292   : > { %v694_v2 = vpack.c.bf16 %v689_v43, %v688_v41  ;;  %v677_v59 = vmul.f32 %v1197_v25, %v663_v58  ;;  %1248 = vmatpush3.bf16.msra.mxu1 %v1297_v57 }
 0x293   : > { %v723_v1 = vld [vmem:[#allocation2] sm:$0xff]  ;;  %1249 = vmatprep.subr.bf16.mxu1 %v1298_v63 }
 0x294   : > { %698 = vst.msk [vmem:[#allocation2 + $0x10] sm:$0xff] %vm416_vm0, %v694_v2  ;;  %v691_v61 = vadd.f32 %v1198_v35, %v677_v59  ;;  %1239 = vmatprep.mubr.msk.bf16.mxu0 %vm416_vm0, %v723_v1 }
 0x296   : > { %v695_v50 = vpack.c.bf16 %v691_v61, %v690_v60  ;;  %1250 = vmatpush3.bf16.msra.mxu1 %v1298_v63 }
 0x297   : > { %v724_v52 = vld [vmem:[#allocation2 + $0x8] sm:$0xff]  ;;  %1251 = vmatprep.subr.bf16.mxu1 %v1299_v3 }
 0x298   : > { %699 = vst.msk [vmem:[#allocation2 + $0x18] sm:$0xff] %vm416_vm0, %v695_v50  ;;  %1240 = vmatmul.mubr.msk.bf16.vlgmr.msra.gmra.mrb[0].mxu0 %vm416_vm0, %v724_v52 }
 0x29a   : > { %1252 = vmatpush3.bf16.msra.mxu1 %v1299_v3 }
 0x29b   : > { %v725_v62 = vld [vmem:[#allocation2 + $0x10] sm:$0xff]  ;;  %1253 = vmatprep.subr.bf16.mxu1 %v1300_v4 }
 0x29c   : > { %1243 = vmatprep.mubr.msk.bf16.mxu0 %vm416_vm0, %v725_v62 }
 0x29e   : > { %1254 = vmatpush3.bf16.msra.mxu1 %v1300_v4 }
 0x29f   : > { %v726_v39 = vld [vmem:[#allocation2 + $0x18] sm:$0xff]  ;;  %1255 = vmatprep.subr.bf16.mxu1 %v1301_v48 }
 0x2a0   : > { %1244 = vmatmul.mubr.msk.bf16.gmra.mrb[4].mxu0 %vm416_vm0, %v726_v39 }
 0x2a2   : > { %1256 = vmatpush3.bf16.msra.mxu1 %v1301_v48 }
 0x2a3   : > { %1257 = vmatprep.subr.bf16.mxu1 %v1302_v6 }
 0x2a6   : > { %1258 = vmatpush3.bf16.msra.mxu1 %v1302_v6 }
 0x2a7   : > { %1259 = vmatprep.subr.bf16.mxu1 %v1303_v5 }
 0x2aa   : > { %1260 = vmatpush3.bf16.msra.mxu1 %v1303_v5 }
 0x2ab   : > { %1261 = vmatprep.subr.bf16.mxu1 %v1304_v7 }
 0x2ae   : > { %1262 = vmatpush3.bf16.msra.mxu1 %v1304_v7 }
 0x36b   : > { %v1241_v8 = vpop.f32.mrb[0].mxu0 }
 0x36c   : > { %v1704_v11 = vadd.f32 %v1241_v8, %v1200_v10  ;;  %v797_v14 = vpop.f32.mrb[1].mxu0 }
 0x36d   : > { %v1706_v49 = vadd.f32 %v1200_v10, %v797_v14  ;;  %v1242_v15 = vpop.f32.mrb[2].mxu0 }
 0x36e   : > { %v838_v16 = vmul.f32 0.044715, %v1704_v11  ;;  %v1709_v17 = vadd.f32 %v1242_v15, %v1200_v10  ;;  %v800_v18 = vpop.f32.mrb[3].mxu0  ;;  %v830_v7 = vmul.f32 0.5, %v1704_v11 }
 0x36f   : > { %v836_v9 = vmul.f32 0.044715, %v1706_v49  ;;  %v1712_v12 = vadd.f32 %v1200_v10, %v800_v18  ;;  %v828_v14 = vmul.f32 0.5, %v1706_v49 }
 0x370   : > { %v846_v19 = vmul.f32 %v838_v16, %v1704_v11  ;;  %v839_v22 = vmul.f32 0.044715, %v1709_v17 }
 0x371   : > { %v837_v23 = vmul.f32 0.044715, %v1712_v12  ;;  %v844_v25 = vmul.f32 %v836_v9, %v1706_v49  ;;  %v829_v15 = vmul.f32 0.5, %v1712_v12 }
 0x372   : > { %v854_v26 = vmul.f32 %v846_v19, %v1704_v11  ;;  %v847_v27 = vmul.f32 %v839_v22, %v1709_v17 }
 0x373   : > { %v1245_v13 = vpop.f32.mrb[4].mxu0  ;;  %v845_v30 = vmul.f32 %v837_v23, %v1712_v12  ;;  %v852_v32 = vmul.f32 %v844_v25, %v1706_v49 }
 0x374   : > { %v855_v34 = vmul.f32 %v847_v27, %v1709_v17  ;;  %v1723_v35 = vadd.f32 %v1245_v13, %v1200_v10  ;;  %v813_v24 = vpop.f32.mrb[5].mxu0  ;;  %v862_v36 = vadd.f32 %v854_v26, %v1704_v11 }
 0x375   : > { %v1726_v20 = vadd.f32 %v1200_v10, %v813_v24  ;;  %v1246_v37 = vpop.f32.mrb[6].mxu0  ;;  %v853_v40 = vmul.f32 %v845_v30, %v1712_v12  ;;  %v860_v42 = vadd.f32 %v852_v32, %v1706_v49 }
 0x376   : > { %v842_v44 = vmul.f32 0.044715, %v1723_v35  ;;  %v825_v28 = vadd.f32 %v1246_v37, %v1200_v10  ;;  %v816_v45 = vpop.f32.mrb[7].mxu0  ;;  %v863_v46 = vadd.f32 %v855_v34, %v1709_v17  ;;  %v870_v47 = vmul.f32 0.7978846, %v862_v36 }
 0x377   : > { %v840_v31 = vmul.f32 0.044715, %v1726_v20  ;;  %v817_v0 = vadd.f32 %v1200_v10, %v816_v45  ;;  %v861_v21 = vadd.f32 %v853_v40, %v1712_v12  ;;  %v868_v51 = vmul.f32 0.7978846, %v860_v42 }
 0x378   : > { %v850_v33 = vmul.f32 %v842_v44, %v1723_v35  ;;  %v843_v53 = vmul.f32 0.044715, %v825_v28  ;;  %v871_v54 = vmul.f32 0.7978846, %v863_v46  ;;  %1337 = vtanh.f32 %v870_v47  ;;  %v902_v47 = vld [vmem:[#allocation3 + $0x10] sm:$0xff] }
 0x379   : > { %v848_v55 = vmul.f32 %v840_v31, %v1726_v20  ;;  %v841_v56 = vmul.f32 0.044715, %v817_v0  ;;  %v869_v29 = vmul.f32 0.7978846, %v861_v21  ;;  %1339 = vtanh.f32 %v868_v51  ;;  %v900_v51 = vld [vmem:[#allocation3] sm:$0xff] }
 0x37a   : > { %v858_v41 = vmul.f32 %v850_v33, %v1723_v35  ;;  %v851_v43 = vmul.f32 %v843_v53, %v825_v28  ;;  %1341 = vtanh.f32 %v871_v54  ;;  %v831_v10 = vmul.f32 0.5, %v1709_v17  ;;  %v903_v33 = vld [vmem:[#allocation3 + $0x18] sm:$0xff] }
 0x37b   : > { %v856_v38 = vmul.f32 %v848_v55, %v1726_v20  ;;  %v849_v58 = vmul.f32 %v841_v56, %v817_v0  ;;  %1343 = vtanh.f32 %v869_v29  ;;  %v834_v17 = vmul.f32 0.5, %v1723_v35  ;;  %v906_v56 = vld [vmem:[#allocation3 + $0x30] sm:$0xff] }
 0x37c   : > { %v859_v2 = vmul.f32 %v851_v43, %v825_v28  ;;  %v866_v59 = vadd.f32 %v858_v41, %v1723_v35  ;;  %v835_v49 = vmul.f32 0.5, %v825_v28  ;;  %v832_v12 = vmul.f32 0.5, %v1726_v20  ;;  %v904_v43 = vld [vmem:[#allocation3 + $0x20] sm:$0xff] }
 0x37d   : > { %v857_v1 = vmul.f32 %v849_v58, %v817_v0  ;;  %v864_v60 = vadd.f32 %v856_v38, %v1726_v20  ;;  %v833_v24 = vmul.f32 0.5, %v817_v0 }
 0x37e   : > { %v867_v61 = vadd.f32 %v859_v2, %v825_v28  ;;  %v874_v50 = vmul.f32 0.7978846, %v866_v59  ;;  %v907_v59 = vld [vmem:[#allocation3 + $0x38] sm:$0xff] }
 0x37f   : > { %v865_v52 = vadd.f32 %v857_v1, %v817_v0  ;;  %v872_v62 = vmul.f32 0.7978846, %v864_v60  ;;  %v901_v0 = vld [vmem:[#allocation3 + $0x8] sm:$0xff] }
 0x380   : > { %v875_v39 = vmul.f32 0.7978846, %v867_v61  ;;  %1345 = vtanh.f32 %v874_v50  ;;  %v905_v50 = vld [vmem:[#allocation3 + $0x28] sm:$0xff] }
 0x381   : > { %v873_v57 = vmul.f32 0.7978846, %v865_v52  ;;  %1347 = vtanh.f32 %v872_v62 }
 0x382   : > { %v1338_v63 = vpop.eup %1337  ;;  %1349 = vtanh.f32 %v875_v39 }
 0x383   : > { %v1340_v3 = vpop.eup %1339  ;;  %v886_v4 = vadd.f32 1.0, %v1338_v63  ;;  %1351 = vtanh.f32 %v873_v57 }
 0x384   : > { %v1342_v48 = vpop.eup %1341  ;;  %v884_v6 = vadd.f32 1.0, %v1340_v3 }
 0x385   : > { %v1344_v5 = vpop.eup %1343  ;;  %v887_v8 = vadd.f32 1.0, %v1342_v48  ;;  %v894_v18 = vmul.f32 %v886_v4, %v830_v7 }
 0x386   : > { %v885_v16 = vadd.f32 1.0, %v1344_v5  ;;  %v892_v19 = vmul.f32 %v884_v6, %v828_v14 }
 0x387   : > { %v895_v9 = vmul.f32 %v887_v8, %v831_v10 }
 0x388   : > { %v893_v22 = vmul.f32 %v885_v16, %v829_v15 }
 0x389   : > { %v909_v23 = vpack.c.bf16 %v895_v9, %v894_v18 }
 0x38a   : > { %v1346_v25 = vpop.eup %1345  ;;  %v908_v26 = vpack.c.bf16 %v893_v22, %v892_v19 }
 0x38b   : > { %v1348_v27 = vpop.eup %1347  ;;  %v890_v13 = vadd.f32 1.0, %v1346_v25 }
 0x38c   : > { %v1350_v30 = vpop.eup %1349  ;;  %1263 = vmatprep.mubr.bf16.mxu1 %v908_v26  ;;  %v888_v11 = vadd.f32 1.0, %v1348_v27 }
 0x38d   : > { %v1352_v32 = vpop.eup %1351  ;;  %1264 = vmatmul.mubr.bf16.vlgmr.msra.gmra.mrb[0].mxu1 %v909_v23  ;;  %v891_v34 = vadd.f32 1.0, %v1350_v30  ;;  %v898_v37 = vmul.f32 %v890_v13, %v834_v17 }
 0x38e   : > { %v889_v36 = vadd.f32 1.0, %v1352_v32  ;;  %v896_v42 = vmul.f32 %v888_v11, %v832_v12 }
 0x38f   : > { %v899_v40 = vmul.f32 %v891_v34, %v835_v49 }
 0x390   : > { %v897_v44 = vmul.f32 %v889_v36, %v833_v24 }
 0x391   : > { %v911_v45 = vpack.c.bf16 %v899_v40, %v898_v37 }
 0x392   : > { %v910_v46 = vpack.c.bf16 %v897_v44, %v896_v42 }
 0x394   : > { %1267 = vmatprep.mubr.bf16.mxu1 %v910_v46 }
 0x395   : > { %1268 = vmatmul.mubr.bf16.gmra.mrb[4].mxu1 %v911_v45 }
 0x460   : > { %v1265_v31 = vpop.f32.mrb[0].mxu1 }
 0x461   : > { %v1043_v21 = vadd.f32 %v1265_v31, %v902_v47  ;;  %v1010_v35 = vpop.f32.mrb[1].mxu1 }
 0x462   : > { %v1041_v28 = vadd.f32 %v1010_v35, %v900_v51  ;;  %v1266_v53 = vpop.f32.mrb[2].mxu1 }
 0x463   : > { %1051 = vst.msk [vmem:[#allocation3 + $0x10] sm:$0xff] %vm416_vm0, %v1043_v21  ;;  %v1044_v20 = vadd.f32 %v1266_v53, %v903_v33  ;;  %v1013_v54 = vpop.f32.mrb[3].mxu1 }
 0x464   : > { %1049 = vst.msk [vmem:[#allocation3] sm:$0xff] %vm416_vm0, %v1041_v28  ;;  %v1042_v55 = vadd.f32 %v1013_v54, %v901_v0 }
 0x465   : > { %1052 = vst.msk [vmem:[#allocation3 + $0x18] sm:$0xff] %vm416_vm0, %v1044_v20 }
 0x466   : > { %1050 = vst.msk [vmem:[#allocation3 + $0x8] sm:$0xff] %vm416_vm0, %v1042_v55 }
 0x468   : > { %v1269_v29 = vpop.f32.mrb[4].mxu1 }
 0x469   : > { %v1047_v41 = vadd.f32 %v1269_v29, %v906_v56  ;;  %v1026_v38 = vpop.f32.mrb[5].mxu1 }
 0x46a   : > { %v1062_v58 = vld [vmem:[#allocation3 + $0x10] sm:$0xff]  ;;  %v1045_v2 = vadd.f32 %v1026_v38, %v904_v43  ;;  %v1270_v1 = vpop.f32.mrb[6].mxu1 }
 0x46b   : > { %1070 = vst.msk [vmem:[%s1755_s20 + $0x10] sm:$0xff] %vm416_vm0, %v1062_v58  ;;  %v1060_v60 = vld [vmem:[#allocation3] sm:$0xff]  ;;  %1055 = vst.msk [vmem:[#allocation3 + $0x30] sm:$0xff] %vm416_vm0, %v1047_v41  ;;  %v1048_v61 = vadd.f32 %v1270_v1, %v907_v59  ;;  %v1029_v52 = vpop.f32.mrb[7].mxu1 }
 0x46c   : > { %1068 = vst.msk [vmem:[%s1755_s20] sm:$0xff] %vm416_vm0, %v1060_v60  ;;  %v1063_v62 = vld [vmem:[#allocation3 + $0x18] sm:$0xff]  ;;  %1053 = vst.msk [vmem:[#allocation3 + $0x20] sm:$0xff] %vm416_vm0, %v1045_v2  ;;  %v1046_v39 = vadd.f32 %v1029_v52, %v905_v50 }
 0x46d   : > { %1071 = vst.msk [vmem:[%s1755_s20 + $0x18] sm:$0xff] %vm416_vm0, %v1063_v62  ;;  %v1061_v57 = vld [vmem:[#allocation3 + $0x8] sm:$0xff]  ;;  %1056 = vst.msk [vmem:[#allocation3 + $0x38] sm:$0xff] %vm416_vm0, %v1048_v61 }
 0x46e   : > { %1069 = vst.msk [vmem:[%s1755_s20 + $0x8] sm:$0xff] %vm416_vm0, %v1061_v57  ;;  %1054 = vst.msk [vmem:[#allocation3 + $0x28] sm:$0xff] %vm416_vm0, %v1046_v39 }
 0x472   : > { %v1066_v63 = vld [vmem:[#allocation3 + $0x30] sm:$0xff] }
 0x473   : > { %1074 = vst.msk [vmem:[%s1755_s20 + $0x30] sm:$0xff] %vm416_vm0, %v1066_v63  ;;  %v1064_v3 = vld [vmem:[#allocation3 + $0x20] sm:$0xff] }
 0x474   : > { %1072 = vst.msk [vmem:[%s1755_s20 + $0x20] sm:$0xff] %vm416_vm0, %v1064_v3  ;;  %v1067_v4 = vld [vmem:[#allocation3 + $0x38] sm:$0xff] }
 0x475   : > { %1075 = vst.msk [vmem:[%s1755_s20 + $0x38] sm:$0xff] %vm416_vm0, %v1067_v4  ;;  %v1065_v48 = vld [vmem:[#allocation3 + $0x28] sm:$0xff] }
 0x476   : > { %1073 = vst.msk [vmem:[%s1755_s20 + $0x28] sm:$0xff] %vm416_vm0, %v1065_v48 }
 0x477 PF: > { %s19_s11 = sadd.s32 1, %s1375_s11   ;;  %s1796_s30 = smov %s1371_s10 }
 0x478   : > { %p16_p5 = scmp.ge.s32.totalorder %s19_s11, 4   ;;  %s1797_s10 = smov %s1799_s12 }
 0x47a   :  { %18 = sbr.rel (!%p16_p5) target bundleno = 2 (0x2), region = 103 }

</bundles_post_ra>
